<compile_context>
chip_gen: v7x
topology: tpu7x:2x2x1
jax: 0.10.0
libtpu: 0.0.40
codegen_flags: <defaults>
</compile_context>

<pallas_src>
import functools

import numpy as np
import jax
import jax.numpy as jnp
from jax import lax
from jax.experimental import pallas as pl
from jax.experimental.pallas import tpu as pltpu

# OGB feature dims (get_atom_feature_dims / get_bond_feature_dims), hardcoded.
ATOM_FEATURE_DIMS = [119, 5, 12, 12, 10, 6, 6, 2, 2]
BOND_FEATURE_DIMS = [5, 6, 2]

LANE = 128      # lane width: pad hidden / node dims to multiples of this
E_TILE = 256    # edge-tile size (bond-embedding streaming granularity)


def _round_up(x, m):
    return ((x + m - 1) // m) * m


def _node_block(np_rows):
    """Node-row block for the finalize MLP (bounds the [*, 2Hp] intermediate)."""
    for cand in (512, 256, 128):
        if np_rows % cand == 0:
            return cand
    return np_rows


# ----------------------------- Pallas kernel ------------------------------ #
def fused_gin_kernel(counts_ref, src_ref, dst_ref, eps_ref, x0_hbm_ref,
                     eemb_ref, w1_ref, b1_ref, w2_ref, b2_ref,
                     last_ref, hid_ref,
                     h_sc, agg_sc, eemb32_sc, x0_sem,
                     *, num_layers, e_tile, n_blk):
    """Grid = (layer, edge_tile).  h_sc carries node features across layers."""
    layer = pl.program_id(0)
    e = pl.program_id(1)
    n_e = pl.num_programs(1)
    num_edges = counts_ref[0]
    num_nodes = counts_ref[1]

    # First grid step: DMA atom embeddings HBM -> resident f32 node scratch.
    @pl.when(jnp.logical_and(layer == 0, e == 0))
    def _():
        cp = pltpu.make_async_copy(x0_hbm_ref, h_sc, x0_sem)
        cp.start()
        cp.wait()

    # Start of a layer: zero the scatter-add accumulator.
    @pl.when(e == 0)
    def _():
        agg_sc[...] = jnp.zeros_like(agg_sc)

    # Stage this tile's bond embeddings (bf16 in HBM) as f32 once.
    eemb32_sc[...] = eemb_ref[...].astype(jnp.float32)

    # ---- sparse gather + GIN message + sparse scatter-add over valid edges --
    base = e * e_tile
    n_valid = jnp.clip(num_edges - base, 0, e_tile)

    def edge_body(t, carry):
        s = src_ref[base + t]
        d = dst_ref[base + t]
        m = jnp.maximum(h_sc[pl.ds(s, 1), :] + eemb32_sc[pl.ds(t, 1), :], 0.0)
        agg_sc[pl.ds(d, 1), :] += m
        return carry

    lax.fori_loop(0, n_valid, edge_body, 0)

    # ---- last edge tile of the layer: (1+eps)*h + agg -> MLP (BNs folded),
    # tiled over node-row blocks to bound the [*, 2Hp] f32 intermediate.
    @pl.when(e == n_e - 1)
    def _():
        is_last = layer == num_layers - 1
        eps = eps_ref[layer]
        w1 = w1_ref[...]            # [Hp, 2Hp] bf16 (inner BN folded)
        b1 = b1_ref[...]            # [1, 2Hp]  f32
        w2 = w2_ref[...]            # [2Hp, Hp] bf16 (outer BN folded)
        b2 = b2_ref[...]            # [1, Hp]   f32
        n_blocks = h_sc.shape[0] // n_blk

        def node_body(i, carry):
            r0 = pl.multiple_of(i * n_blk, n_blk)
            rows = pl.ds(r0, n_blk)
            pre = (1.0 + eps) * h_sc[rows, :] + agg_sc[rows, :]
            z = jnp.dot(pre.astype(jnp.bfloat16), w1,
                        preferred_element_type=jnp.float32) + b1
            z = jnp.maximum(z, 0.0)                      # BN1 folded + ReLU
            z = jnp.dot(z.astype(jnp.bfloat16), w2,
                        preferred_element_type=jnp.float32) + b2
            # Mask padded node rows so junk can never grow / leak via gathers.
            rid = lax.broadcasted_iota(jnp.int32, z.shape, 0) + r0
            z = jnp.where(rid < num_nodes, z, 0.0)
            zr = jnp.maximum(z, 0.0)                     # ReLU (non-last layers)
            h_sc[rows, :] = zr                           # next layer's input
            # dropout is identity in eval(); last layer has no ReLU.
            hid_ref[rows, :] = jnp.where(is_last, z, zr).astype(jnp.bfloat16)
            last_ref[rows, :] = z                        # resident; final write wins
            return carry

        lax.fori_loop(0, n_blocks, node_body, 0)


def fused_gin_forward(counts, src_p, dst_p, eps, x0_p, eemb_p, w1_p, b1_p,
                      w2_p, b2_p, *, num_layers, n_e, Np, Hp, n_blk):
    L = num_layers
    kernel = functools.partial(fused_gin_kernel, num_layers=L,
                               e_tile=E_TILE, n_blk=n_blk)

    # Right-sized VMEM budget (scratches + output blocks + streamed inputs).
    vmem_bytes = (
        2 * Np * Hp * 4                # h_sc + agg_sc (f32, resident)
        + 2 * Np * Hp * 4              # last-layer f32 output block (margin 2x)
        + 2 * Np * Hp * 2              # per-layer bf16 hidden output (2x buf)
        + E_TILE * Hp * 4              # staged f32 bond-embedding tile
        + 2 * E_TILE * Hp * 2          # streamed bf16 bond-embedding tile (2x)
        + 2 * 2 * (Hp * 2 * Hp * 2)    # W1 + W2 bf16 blocks (2x buffered)
        + 2 * 2 * (3 * Hp) * 4         # biases (2x buffered)
        + 2 * n_blk * 2 * Hp * 4       # finalize intermediates
    )
    vmem_limit = int(min(vmem_bytes + (8 << 20), 100 << 20))

    return pl.pallas_call(
        kernel,
        out_shape=(jax.ShapeDtypeStruct((Np, Hp), jnp.float32),       # last layer
                   jax.ShapeDtypeStruct((L, Np, Hp), jnp.bfloat16)),  # all layers
        grid=(L, n_e),
        in_specs=[
            pl.BlockSpec(memory_space=pltpu.SMEM),                    # counts [2]
            pl.BlockSpec(memory_space=pltpu.SMEM),                    # src  [Ep]
            pl.BlockSpec(memory_space=pltpu.SMEM),                    # dst  [Ep]
            pl.BlockSpec(memory_space=pltpu.SMEM),                    # eps  [L]
            pl.BlockSpec(memory_space=pl.ANY),                        # x0 (HBM)
            pl.BlockSpec((None, E_TILE, Hp), lambda l, e: (l, e, 0)),  # bond emb bf16
            pl.BlockSpec((None, Hp, 2 * Hp), lambda l, e: (l, 0, 0)),  # W1 bf16
            pl.BlockSpec((None, 1, 2 * Hp), lambda l, e: (l, 0, 0)),   # b1 f32
            pl.BlockSpec((None, 2 * Hp, Hp), lambda l, e: (l, 0, 0)),  # W2 bf16
            pl.BlockSpec((None, 1, Hp), lambda l, e: (l, 0, 0)),       # b2 f32
        ],
        out_specs=(
            pl.BlockSpec((Np, Hp), lambda l, e: (0, 0)),               # last, f32
            pl.BlockSpec((None, Np, Hp), lambda l, e: (l, 0, 0)),      # hidden, bf16
        ),
        scratch_shapes=[pltpu.VMEM((Np, Hp), jnp.float32),    # resident node feats h
                        pltpu.VMEM((Np, Hp), jnp.float32),    # scatter-add accumulator
                        pltpu.VMEM((E_TILE, Hp), jnp.float32),  # staged bond embeddings
                        pltpu.SemaphoreType.DMA],             # x0 copy semaphore
        compiler_params=pltpu.CompilerParams(
            dimension_semantics=("arbitrary", "arbitrary"),
            vmem_limit_bytes=vmem_limit),
    )(counts, src_p, dst_p, eps, x0_p, eemb_p, w1_p, b1_p, w2_p, b2_p)


# ------------------------------- JAX glue --------------------------------- #
def xavier_uniform(key, shape):
    fan_in, fan_out = shape
    a = float(np.sqrt(6.0 / (fan_in + fan_out)))
    return jax.random.uniform(key, shape, jnp.float32, -a, a)


def max_norm_renorm(w, max_norm=1.0):
    # nn.Embedding(max_norm=1): looked-up rows with ||w|| > 1 are rescaled.
    n = jnp.linalg.norm(w, axis=-1, keepdims=True)
    return w * jnp.minimum(1.0, max_norm / jnp.maximum(n, 1e-12))


def embed_sum(tables, idx):
    """Atom/BondEncoder: sum of per-feature embedding lookups."""
    out = jnp.zeros((idx.shape[0], tables[0].shape[1]), jnp.float32)
    for f, tab in enumerate(tables):
        out = out + jnp.take(max_norm_renorm(tab), idx[:, f], axis=0)
    return out


def linear_init(key, fan_in, fan_out):
    bound = 1.0 / np.sqrt(fan_in)
    kw, kb = jax.random.split(key)
    w = jax.random.uniform(kw, (fan_in, fan_out), jnp.float32, -bound, bound)
    b = jax.random.uniform(kb, (1, fan_out), jnp.float32, -bound, bound)
    return w, b


def init_params(key, num_layer, hidden_size):
    H = hidden_size
    keys = iter(jax.random.split(key, 8 + 16 * num_layer))
    atom_emb = [xavier_uniform(next(keys), (d, H)) for d in ATOM_FEATURE_DIMS]
    bn_eps = 1e-5
    layers = []
    for _ in range(num_layer):
        bond_emb = [xavier_uniform(next(keys), (d, H)) for d in BOND_FEATURE_DIMS]
        w1, b1 = linear_init(next(keys), H, 2 * H)
        w2, b2 = linear_init(next(keys), 2 * H, H)
        # BatchNorm (eval): scale = gamma/sqrt(var+eps), shift = beta - mean*scale
        s1 = jnp.full((1, 2 * H), 1.0 / np.sqrt(1.0 + bn_eps), jnp.float32)
        t1 = jnp.zeros((1, 2 * H), jnp.float32)
        s2 = jnp.full((1, H), 1.0 / np.sqrt(1.0 + bn_eps), jnp.float32)
        t2 = jnp.zeros((1, H), jnp.float32)
        eps = jnp.zeros((1,), jnp.float32)     # GIN eps parameter (init 0)
        layers.append(dict(bond_emb=bond_emb, w1=w1, b1=b1, s1=s1, t1=t1,
                           w2=w2, b2=b2, s2=s2, t2=t2, eps=eps))
    return dict(num_layer=num_layer, hidden_size=H,
                atom_emb=atom_emb, layers=layers)


def gnn_node_forward(params, x_cat, edge_index, edge_attr, batch):
    """Forward of GNN_node (gin, batch_norm, JK='last', no residual, eval)."""
    del batch  # only used by non-batch norm layers
    L = params['num_layer']
    H = params['hidden_size']
    N = x_cat.shape[0]
    E = edge_attr.shape[0]
    Hp = _round_up(H, LANE)
    Np = _round_up(N, LANE)
    Ep = _round_up(max(E, 1), E_TILE)
    n_e = Ep // E_TILE
    n_blk = _node_block(Np)

    src = edge_index[0].astype(jnp.int32)
    dst = edge_index[1].astype(jnp.int32)
    src_p = jnp.zeros((Ep,), jnp.int32).at[:E].set(src)
    dst_p = jnp.zeros((Ep,), jnp.int32).at[:E].set(dst)
    counts = jnp.array([E, N], jnp.int32)

    x0 = embed_sum(params['atom_emb'], x_cat)                 # AtomEncoder [N, H]
    x0_p = jnp.zeros((Np, Hp), jnp.float32).at[:N, :H].set(x0)

    eembs, w1s, b1s, w2s, b2s, epss = [], [], [], [], [], []
    for lp in params['layers']:
        eemb = embed_sum(lp['bond_emb'], edge_attr)           # BondEncoder [E, H]
        eembs.append(jnp.zeros((Ep, Hp), jnp.float32).at[:E, :H].set(eemb))
        # fold eval-mode BatchNorm affine into the linear layers
        w1f = lp['w1'] * lp['s1']
        b1f = lp['b1'] * lp['s1'] + lp['t1']
        w2f = lp['w2'] * lp['s2']
        b2f = lp['b2'] * lp['s2'] + lp['t2']
        w1s.append(jnp.zeros((Hp, 2 * Hp), jnp.float32).at[:H, :2 * H].set(w1f))
        b1s.append(jnp.zeros((1, 2 * Hp), jnp.float32).at[:, :2 * H].set(b1f))
        w2s.append(jnp.zeros((2 * Hp, Hp), jnp.float32).at[:2 * H, :H].set(w2f))
        b2s.append(jnp.zeros((1, Hp), jnp.float32).at[:, :H].set(b2f))
        epss.append(lp['eps'][0])

    eemb_p = jnp.stack(eembs).astype(jnp.bfloat16)   # [L, Ep, Hp] bf16
    w1_p = jnp.stack(w1s).astype(jnp.bfloat16)       # [L, Hp, 2Hp] bf16
    b1_p = jnp.stack(b1s)                            # [L, 1, 2Hp] f32
    w2_p = jnp.stack(w2s).astype(jnp.bfloat16)       # [L, 2Hp, Hp] bf16
    b2_p = jnp.stack(b2s)                            # [L, 1, Hp]  f32
    eps = jnp.stack(epss).astype(jnp.float32)        # [L]

    h_last_p, h_hid_p = fused_gin_forward(
        counts, src_p, dst_p, eps, x0_p, eemb_p, w1_p, b1_p, w2_p, b2_p,
        num_layers=L, n_e=n_e, Np=Np, Hp=Hp, n_blk=n_blk)

    node_representation = h_last_p[:N, :H]                   # JK == 'last', f32
    # Intermediate layers of h_list are returned from the bf16 writeback.
    h_list = [x0] + [h_hid_p[l, :N, :H].astype(jnp.float32) for l in range(L - 1)]
    h_list.append(node_representation)
    return node_representation, h_list


# ------------------------------ references -------------------------------- #
def gnn_node_reference_f32(params, x_cat, edge_index, edge_attr):
    """Pure float32 spec (matches the PyTorch module in eval mode)."""
    L = params['num_layer']
    src, dst = edge_index[0], edge_index[1]
    h = embed_sum(params['atom_emb'], x_cat)
    for layer in range(L):
        lp = params['layers'][layer]
        eemb = embed_sum(lp['bond_emb'], edge_attr)
        m = jnp.maximum(h[src] + eemb, 0.0)
        agg = jnp.zeros_like(h).at[dst].add(m)
        pre = (1.0 + lp['eps'][0]) * h + agg
        z = jnp.maximum((pre @ lp['w1'] + lp['b1']) * lp['s1'] + lp['t1'], 0.0)
        z = (z @ lp['w2'] + lp['b2']) * lp['s2'] + lp['t2']
        if layer != L - 1:
            z = jnp.maximum(z, 0.0)
        h = z
    return h


def gnn_node_reference_kernel_math(params, x_cat, edge_index, edge_attr):
    """Mirrors the kernel arithmetic: f32 gather/scatter, bf16 bond embeddings,
    bf16-operand / f32-accumulate MLP matmuls with BN folded in."""
    bf = jnp.bfloat16
    L = params['num_layer']
    src, dst = edge_index[0], edge_index[1]
    h = embed_sum(params['atom_emb'], x_cat)
    for layer in range(L):
        lp = params['layers'][layer]
        eemb = embed_sum(lp['bond_emb'], edge_attr).astype(bf).astype(jnp.float32)
        m = jnp.maximum(h[src] + eemb, 0.0)
        agg = jnp.zeros_like(h).at[dst].add(m)
        pre = (1.0 + lp['eps'][0]) * h + agg
        w1f = (lp['w1'] * lp['s1']).astype(bf)
        b1f = lp['b1'] * lp['s1'] + lp['t1']
        w2f = (lp['w2'] * lp['s2']).astype(bf)
        b2f = lp['b2'] * lp['s2'] + lp['t2']
        z = jnp.dot(pre.astype(bf), w1f, preferred_element_type=jnp.float32) + b1f
        z = jnp.maximum(z, 0.0)
        z = jnp.dot(z.astype(bf), w2f, preferred_element_type=jnp.float32) + b2f
        if layer != L - 1:
            z = jnp.maximum(z, 0.0)
        h = z
    return h


# --------------------------------- main ------------------------------------ #
if __name__ == "__main__":
    key = jax.random.PRNGKey(0)
    k_param, k_x, k_e, k_a = jax.random.split(key, 4)

    num_layer = 2
    hidden_size = 32
    N = 50      # num atoms
    E = 300     # num bonds (directed edges) -> exercises two edge tiles

    params = init_params(k_param, num_layer, hidden_size)

    # categorical atom features [N, 9]
    x_cols = [jax.random.randint(jax.random.fold_in(k_x, f), (N,), 0, d)
              for f, d in enumerate(ATOM_FEATURE_DIMS)]
    x_cat = jnp.stack(x_cols, axis=1).astype(jnp.int32)

    # edge_index [2, E], edge_attr [E, 3]
    edge_index = jax.random.randint(k_e, (2, E), 0, N).astype(jnp.int32)
    a_cols = [jax.random.randint(jax.random.fold_in(k_a, f), (E,), 0, d)
              for f, d in enumerate(BOND_FEATURE_DIMS)]
    edge_attr = jnp.stack(a_cols, axis=1).astype(jnp.int32)
    batch = jnp.zeros((N,), jnp.int32)

    node_repr, h_list = gnn_node_forward(params, x_cat, edge_index, edge_attr, batch)
    node_repr = jax.block_until_ready(node_repr)

    assert node_repr.shape == (N, hidden_size)
    assert len(h_list) == num_layer + 1

    # Tight check: JAX reference using the same mixed-precision arithmetic.
    ref_k = gnn_node_reference_kernel_math(params, x_cat, edge_index, edge_attr)
    np.testing.assert_allclose(np.asarray(node_repr), np.asarray(ref_k),
                               rtol=2e-3, atol=2e-3)

    # Loose sanity check vs. the pure-f32 module spec (bf16 quantization drift).
    ref_f32 = gnn_node_reference_f32(params, x_cat, edge_index, edge_attr)
    np.testing.assert_allclose(np.asarray(node_repr), np.asarray(ref_f32),
                               rtol=5e-2, atol=1e-1)

    print("KERNEL_OK")
</pallas_src>

<mosaic_0001>
module attributes {stable_mosaic.version = 11 : i64} {
  func.func @fused_gin_kernel(%arg0: i32, %arg1: i32, %arg2: memref<2xi32, #tpu.memory_space<smem>>, %arg3: memref<512xi32, #tpu.memory_space<smem>>, %arg4: memref<512xi32, #tpu.memory_space<smem>>, %arg5: memref<2xf32, #tpu.memory_space<smem>>, %arg6: memref<128x128xf32, #tpu.memory_space<any>>, %arg7: memref<1x256x128xbf16, #tpu.memory_space<vmem>>, %arg8: memref<1x128x256xbf16, #tpu.memory_space<vmem>>, %arg9: memref<1x1x256xf32, #tpu.memory_space<vmem>>, %arg10: memref<1x256x128xbf16, #tpu.memory_space<vmem>>, %arg11: memref<1x1x128xf32, #tpu.memory_space<vmem>>, %arg12: memref<128x128xf32, #tpu.memory_space<vmem>>, %arg13: memref<1x128x128xbf16, #tpu.memory_space<vmem>>, %arg14: memref<128x128xf32, #tpu.memory_space<vmem>>, %arg15: memref<128x128xf32, #tpu.memory_space<vmem>>, %arg16: memref<256x128xf32, #tpu.memory_space<vmem>>, %arg17: memref<!tpu.dma_semaphore, #tpu.memory_space<semaphore_mem>>) attributes {dimension_semantics = [#tpu.dimension_semantics<arbitrary>, #tpu.dimension_semantics<arbitrary>], iteration_bounds = array<i64: 2, 2>, scalar_prefetch = 0 : i64, scratch_operands = 4 : i64, tpu.core_type = #tpu.core_type<tc>, window_params = [{transform_indices = @transform_0, window_bounds = array<i64: 2>}, {transform_indices = @transform_1, window_bounds = array<i64: 512>}, {transform_indices = @transform_2, window_bounds = array<i64: 512>}, {transform_indices = @transform_3, window_bounds = array<i64: 2>}, {}, {transform_indices = @transform_5, window_bounds = array<i64: 1, 256, 128>}, {transform_indices = @transform_6, window_bounds = array<i64: 1, 128, 256>}, {transform_indices = @transform_7, window_bounds = array<i64: 1, 1, 256>}, {transform_indices = @transform_8, window_bounds = array<i64: 1, 256, 128>}, {transform_indices = @transform_9, window_bounds = array<i64: 1, 1, 128>}, {pipeline_mode = #tpu.pipeline_mode<synchronous>, transform_indices = @transform_10, window_bounds = array<i64: 128, 128>}, {transform_indices = @transform_11, window_bounds = array<i64: 1, 128, 128>}]} {
    %c0 = arith.constant 0 : index
    %0 = memref.load %arg2[%c0] : memref<2xi32, #tpu.memory_space<smem>>
    %c1 = arith.constant 1 : index
    %1 = memref.load %arg2[%c1] : memref<2xi32, #tpu.memory_space<smem>>
    %c0_i32 = arith.constant 0 : i32
    %2 = arith.cmpi eq, %arg0, %c0_i32 : i32
    %c0_i32_0 = arith.constant 0 : i32
    %3 = arith.cmpi eq, %arg1, %c0_i32_0 : i32
    %4 = arith.andi %2, %3 : i1
    %5 = arith.extui %4 : i1 to i32
    %c0_i32_1 = arith.constant 0 : i32
    %6 = arith.cmpi ne, %5, %c0_i32_1 : i32
    scf.if %6 {
      tpu.enqueue_dma source(%arg6 : memref<128x128xf32, #tpu.memory_space<any>>) target(%arg14 : memref<128x128xf32, #tpu.memory_space<vmem>>) target_semaphore(%arg17 : memref<!tpu.dma_semaphore, #tpu.memory_space<semaphore_mem>>)
      tpu.wait_dma2 semaphore(%arg17 : memref<!tpu.dma_semaphore, #tpu.memory_space<semaphore_mem>>) src(%arg6 : memref<128x128xf32, #tpu.memory_space<any>>) dst(%arg14 : memref<128x128xf32, #tpu.memory_space<vmem>>)
    } else {
    }
    %c0_i32_2 = arith.constant 0 : i32
    %7 = arith.cmpi eq, %arg1, %c0_i32_2 : i32
    %8 = arith.extui %7 : i1 to i32
    %c0_i32_3 = arith.constant 0 : i32
    %9 = arith.cmpi ne, %8, %c0_i32_3 : i32
    scf.if %9 {
      %cst = arith.constant 0.000000e+00 : f32
      %23 = vector.broadcast %cst : f32 to vector<128x128xf32>
      %c0_15 = arith.constant 0 : index
      %c0_16 = arith.constant 0 : index
      %24 = vector.load %arg15[%c0_15, %c0_16] : memref<128x128xf32, #tpu.memory_space<vmem>>, vector<128x128xf32>
      tpu.vector_store %arg15[%c0_15, %c0_16], %23 {strides = array<i32>} : memref<128x128xf32, #tpu.memory_space<vmem>>, vector<128x128xf32>,
    } else {
    }
    %c0_4 = arith.constant 0 : index
    %c0_5 = arith.constant 0 : index
    %c0_6 = arith.constant 0 : index
    %10 = vector.load %arg7[%c0_4, %c0_5, %c0_6] : memref<1x256x128xbf16, #tpu.memory_space<vmem>>, vector<1x256x128xbf16>
    %11 = vector.shape_cast %10 : vector<1x256x128xbf16> to vector<256x128xbf16>
    %12 = arith.extf %11 : vector<256x128xbf16> to vector<256x128xf32>
    %c0_7 = arith.constant 0 : index
    %c0_8 = arith.constant 0 : index
    %13 = vector.load %arg16[%c0_7, %c0_8] : memref<256x128xf32, #tpu.memory_space<vmem>>, vector<256x128xf32>
    tpu.vector_store %arg16[%c0_7, %c0_8], %12 {strides = array<i32>} : memref<256x128xf32, #tpu.memory_space<vmem>>, vector<256x128xf32>,
    %c256_i32 = arith.constant 256 : i32
    %14 = arith.muli %arg1, %c256_i32 : i32
    %15 = arith.subi %0, %14 : i32
    %c0_i32_9 = arith.constant 0 : i32
    %c256_i32_10 = arith.constant 256 : i32
    %16 = arith.maxsi %c0_i32_9, %15 : i32
    %17 = arith.minsi %c256_i32_10, %16 : i32
    %c0_i32_11 = arith.constant 0 : i32
    %c0_i32_12 = arith.constant 0 : i32
    %18 = arith.subi %17, %c0_i32_12 : i32
    %19 = arith.addi %c0_i32_12, %18 : i32
    %c1_i32 = arith.constant 1 : i32
    scf.for %arg18 = %c0_i32_12 to %19 step %c1_i32  : i32 {
      %23 = arith.addi %14, %arg18 : i32
      %24 = arith.index_cast %23 : i32 to index
      %25 = memref.load %arg3[%24] : memref<512xi32, #tpu.memory_space<smem>>
      %26 = arith.addi %14, %arg18 : i32
      %27 = arith.index_cast %26 : i32 to index
      %28 = memref.load %arg4[%27] : memref<512xi32, #tpu.memory_space<smem>>
      %29 = arith.index_cast %25 : i32 to index
      %c0_15 = arith.constant 0 : index
      %30 = vector.load %arg14[%29, %c0_15] : memref<128x128xf32, #tpu.memory_space<vmem>>, vector<1x128xf32>
      %31 = arith.index_cast %arg18 : i32 to index
      %c0_16 = arith.constant 0 : index
      %32 = vector.load %arg16[%31, %c0_16] : memref<256x128xf32, #tpu.memory_space<vmem>>, vector<1x128xf32>
      %33 = arith.addf %30, %32 : vector<1x128xf32>
      %cst = arith.constant 0.000000e+00 : f32
      %34 = vector.broadcast %cst : f32 to vector<1x128xf32>
      %35 = arith.maximumf %33, %34 : vector<1x128xf32>
      %36 = arith.index_cast %28 : i32 to index
      %c0_17 = arith.constant 0 : index
      %37 = vector.load %arg15[%36, %c0_17] : memref<128x128xf32, #tpu.memory_space<vmem>>, vector<1x128xf32>
      %38 = arith.addf %37, %35 : vector<1x128xf32>
      %39 = arith.index_cast %28 : i32 to index
      %c0_18 = arith.constant 0 : index
      %40 = vector.load %arg15[%39, %c0_18] : memref<128x128xf32, #tpu.memory_space<vmem>>, vector<1x128xf32>
      tpu.vector_store %arg15[%39, %c0_18], %38 {strides = array<i32>} : memref<128x128xf32, #tpu.memory_space<vmem>>, vector<1x128xf32>,
    }
    %c1_i32_13 = arith.constant 1 : i32
    %20 = arith.cmpi eq, %arg1, %c1_i32_13 : i32
    %21 = arith.extui %20 : i1 to i32
    %c0_i32_14 = arith.constant 0 : i32
    %22 = arith.cmpi ne, %21, %c0_i32_14 : i32
    scf.if %22 {
      %c1_i32_15 = arith.constant 1 : i32
      %23 = arith.cmpi eq, %arg0, %c1_i32_15 : i32
      %24 = arith.index_cast %arg0 : i32 to index
      %25 = memref.load %arg5[%24] : memref<2xf32, #tpu.memory_space<smem>>
      %c0_16 = arith.constant 0 : index
      %c0_17 = arith.constant 0 : index
      %c0_18 = arith.constant 0 : index
      %26 = vector.load %arg8[%c0_16, %c0_17, %c0_18] : memref<1x128x256xbf16, #tpu.memory_space<vmem>>, vector<1x128x256xbf16>
      %27 = vector.shape_cast %26 : vector<1x128x256xbf16> to vector<128x256xbf16>
      %c0_19 = arith.constant 0 : index
      %c0_20 = arith.constant 0 : index
      %c0_21 = arith.constant 0 : index
      %28 = vector.load %arg9[%c0_19, %c0_20, %c0_21] : memref<1x1x256xf32, #tpu.memory_space<vmem>>, vector<1x1x256xf32>
      %29 = vector.shape_cast %28 : vector<1x1x256xf32> to vector<1x256xf32>
      %c0_22 = arith.constant 0 : index
      %c0_23 = arith.constant 0 : index
      %c0_24 = arith.constant 0 : index
      %30 = vector.load %arg10[%c0_22, %c0_23, %c0_24] : memref<1x256x128xbf16, #tpu.memory_space<vmem>>, vector<1x256x128xbf16>
      %31 = vector.shape_cast %30 : vector<1x256x128xbf16> to vector<256x128xbf16>
      %c0_25 = arith.constant 0 : index
      %c0_26 = arith.constant 0 : index
      %c0_27 = arith.constant 0 : index
      %32 = vector.load %arg11[%c0_25, %c0_26, %c0_27] : memref<1x1x128xf32, #tpu.memory_space<vmem>>, vector<1x1x128xf32>
      %33 = vector.shape_cast %32 : vector<1x1x128xf32> to vector<1x128xf32>
      %c0_i32_28 = arith.constant 0 : i32
      %c128_i32 = arith.constant 128 : i32
      %34 = arith.muli %c0_i32_28, %c128_i32 : i32
      %35 = tpu.assume_multiple %34, 128 : i32
      %cst = arith.constant 1.000000e+00 : f32
      %36 = arith.addf %cst, %25 : f32
      %37 = arith.index_cast %35 : i32 to index
      %c0_29 = arith.constant 0 : index
      %38 = vector.load %arg14[%37, %c0_29] : memref<128x128xf32, #tpu.memory_space<vmem>>, vector<128x128xf32>
      %39 = vector.broadcast %36 : f32 to vector<128x128xf32>
      %40 = arith.mulf %39, %38 : vector<128x128xf32>
      %41 = arith.index_cast %35 : i32 to index
      %c0_30 = arith.constant 0 : index
      %42 = vector.load %arg15[%41, %c0_30] : memref<128x128xf32, #tpu.memory_space<vmem>>, vector<128x128xf32>
      %43 = arith.addf %40, %42 : vector<128x128xf32>
      %44 = arith.truncf %43 : vector<128x128xf32> to vector<128x128xbf16>
      %cst_31 = arith.constant dense<0.000000e+00> : vector<128x256xf32>
      %45 = tpu.matmul %44, %27, %cst_31 {dimension_numbers = #tpu.dot_dimension_numbers<[1], [0], [0], [1], [0, 0, 1, 1], [], []>} : vector<128x128xbf16>, vector<128x256xbf16>, vector<128x256xf32> -> vector<128x256xf32>
      %46 = vector.broadcast %29 : vector<1x256xf32> to vector<128x256xf32>
      %47 = arith.addf %45, %46 : vector<128x256xf32>
      %cst_32 = arith.constant 0.000000e+00 : f32
      %48 = vector.broadcast %cst_32 : f32 to vector<128x256xf32>
      %49 = arith.maximumf %47, %48 : vector<128x256xf32>
      %50 = arith.truncf %49 : vector<128x256xf32> to vector<128x256xbf16>
      %cst_33 = arith.constant dense<0.000000e+00> : vector<128x128xf32>
      %51 = tpu.matmul %50, %31, %cst_33 {dimension_numbers = #tpu.dot_dimension_numbers<[1], [0], [0], [1], [0, 0, 1, 1], [], []>} : vector<128x256xbf16>, vector<256x128xbf16>, vector<128x128xf32> -> vector<128x128xf32>
      %52 = vector.broadcast %33 : vector<1x128xf32> to vector<128x128xf32>
      %53 = arith.addf %51, %52 : vector<128x128xf32>
      %54 = tpu.iota {dimensions = array<i32: 0>} : vector<128x128xi32>
      %55 = vector.broadcast %35 : i32 to vector<128x128xi32>
      %56 = arith.addi %54, %55 : vector<128x128xi32>
      %57 = vector.broadcast %1 : i32 to vector<128x128xi32>
      %58 = arith.cmpi slt, %56, %57 : vector<128x128xi32>
      %cst_34 = arith.constant 0.000000e+00 : f32
      %59 = vector.broadcast %cst_34 : f32 to vector<128x128xf32>
      %60 = arith.select %58, %53, %59 : vector<128x128xi1>, vector<128x128xf32>
      %cst_35 = arith.constant 0.000000e+00 : f32
      %61 = vector.broadcast %cst_35 : f32 to vector<128x128xf32>
      %62 = arith.maximumf %60, %61 : vector<128x128xf32>
      %63 = arith.index_cast %35 : i32 to index
      %c0_36 = arith.constant 0 : index
      %64 = vector.load %arg14[%63, %c0_36] : memref<128x128xf32, #tpu.memory_space<vmem>>, vector<128x128xf32>
      tpu.vector_store %arg14[%63, %c0_36], %62 {strides = array<i32>} : memref<128x128xf32, #tpu.memory_space<vmem>>, vector<128x128xf32>,
      %65 = arith.select %23, %60, %62 : vector<128x128xf32>
      %66 = arith.truncf %65 : vector<128x128xf32> to vector<128x128xbf16>
      %c0_37 = arith.constant 0 : index
      %67 = arith.index_cast %35 : i32 to index
      %c0_38 = arith.constant 0 : index
      %68 = vector.load %arg13[%c0_37, %67, %c0_38] : memref<1x128x128xbf16, #tpu.memory_space<vmem>>, vector<1x128x128xbf16>
      %69 = vector.shape_cast %68 : vector<1x128x128xbf16> to vector<128x128xbf16>
      %70 = vector.shape_cast %66 : vector<128x128xbf16> to vector<1x128x128xbf16>
      tpu.vector_store %arg13[%c0_37, %67, %c0_38], %70 {strides = array<i32>} : memref<1x128x128xbf16, #tpu.memory_space<vmem>>, vector<1x128x128xbf16>,
      %71 = arith.index_cast %35 : i32 to index
      %c0_39 = arith.constant 0 : index
      %72 = vector.load %arg12[%71, %c0_39] : memref<128x128xf32, #tpu.memory_space<vmem>>, vector<128x128xf32>
      tpu.vector_store %arg12[%71, %c0_39], %60 {strides = array<i32>} : memref<128x128xf32, #tpu.memory_space<vmem>>, vector<128x128xf32>,
      %c1_i32_40 = arith.constant 1 : i32
    } else {
    }
    return
  }
  func.func @transform_0(%arg0: i32, %arg1: i32) -> i32 {
    %c0_i32 = arith.constant 0 : i32
    %c0_i32_0 = arith.constant 0 : i32
    return %c0_i32 : i32
  }
  func.func @transform_1(%arg0: i32, %arg1: i32) -> i32 {
    %c0_i32 = arith.constant 0 : i32
    %c0_i32_0 = arith.constant 0 : i32
    return %c0_i32 : i32
  }
  func.func @transform_2(%arg0: i32, %arg1: i32) -> i32 {
    %c0_i32 = arith.constant 0 : i32
    %c0_i32_0 = arith.constant 0 : i32
    return %c0_i32 : i32
  }
  func.func @transform_3(%arg0: i32, %arg1: i32) -> i32 {
    %c0_i32 = arith.constant 0 : i32
    %c0_i32_0 = arith.constant 0 : i32
    return %c0_i32 : i32
  }
  func.func @transform_5(%arg0: i32, %arg1: i32) -> (i32, i32, i32) {
    %c0_i32 = arith.constant 0 : i32
    %c0_i32_0 = arith.constant 0 : i32
    return %arg0, %arg1, %c0_i32 : i32, i32, i32
  }
  func.func @transform_6(%arg0: i32, %arg1: i32) -> (i32, i32, i32) {
    %c0_i32 = arith.constant 0 : i32
    %c0_i32_0 = arith.constant 0 : i32
    %c0_i32_1 = arith.constant 0 : i32
    return %arg0, %c0_i32, %c0_i32_0 : i32, i32, i32
  }
  func.func @transform_7(%arg0: i32, %arg1: i32) -> (i32, i32, i32) {
    %c0_i32 = arith.constant 0 : i32
    %c0_i32_0 = arith.constant 0 : i32
    %c0_i32_1 = arith.constant 0 : i32
    return %arg0, %c0_i32, %c0_i32_0 : i32, i32, i32
  }
  func.func @transform_8(%arg0: i32, %arg1: i32) -> (i32, i32, i32) {
    %c0_i32 = arith.constant 0 : i32
    %c0_i32_0 = arith.constant 0 : i32
    %c0_i32_1 = arith.constant 0 : i32
    return %arg0, %c0_i32, %c0_i32_0 : i32, i32, i32
  }
  func.func @transform_9(%arg0: i32, %arg1: i32) -> (i32, i32, i32) {
    %c0_i32 = arith.constant 0 : i32
    %c0_i32_0 = arith.constant 0 : i32
    %c0_i32_1 = arith.constant 0 : i32
    return %arg0, %c0_i32, %c0_i32_0 : i32, i32, i32
  }
  func.func @transform_10(%arg0: i32, %arg1: i32) -> (i32, i32) {
    %c0_i32 = arith.constant 0 : i32
    %c0_i32_0 = arith.constant 0 : i32
    %c0_i32_1 = arith.constant 0 : i32
    return %c0_i32, %c0_i32_0 : i32, i32
  }
  func.func @transform_11(%arg0: i32, %arg1: i32) -> (i32, i32, i32) {
    %c0_i32 = arith.constant 0 : i32
    %c0_i32_0 = arith.constant 0 : i32
    %c0_i32_1 = arith.constant 0 : i32
    return %arg0, %c0_i32, %c0_i32_0 : i32, i32, i32
  }
}

</mosaic_0001>

<bundles_post_ra>
// kernel: tpu_custom_call.1
= control target key start
LH: loop header
LB: loop body
LE: loop exit
PB: predicated region body
PF: predicated region fallthrough
CT: control target
= control target key end

     0   :  { %s3500_s0 = inlined_call_operand.hbm [shape: s32[2], index: 0, kind: input, shape index: {}]   ;;  %s3501_s1 = inlined_call_operand.hbm [shape: s32[512], index: 1, kind: input, shape index: {}]   ;;  %s3502_s2 = inlined_call_operand.vmem [shape: s32[512], index: 2, kind: input, shape index: {}]   ;;  %s3503_s3 = inlined_call_operand.vmem [shape: f32[2], index: 3, kind: input, shape index: {}]   ;;  %s3504_s4 = inlined_call_operand.hbm [shape: f32[128,128], index: 4, kind: input, shape index: {}]   ;;  %s3505_s5 = inlined_call_operand.hbm [shape: bf16[2,512,128], index: 5, kind: input, shape index: {}]   ;;  %s3506_s6 = inlined_call_operand.hbm [shape: bf16[2,128,256], index: 6, kind: input, shape index: {}]   ;;  %s3507_s7 = inlined_call_operand.vmem [shape: f32[2,1,256], index: 7, kind: input, shape index: {}]   ;;  %s3508_s8 = inlined_call_operand.hbm [shape: bf16[2,256,128], index: 8, kind: input, shape index: {}]   ;;  %s3509_s9 = inlined_call_operand.vmem [shape: f32[2,1,128], index: 9, kind: input, shape index: {}]   ;;  %s3510_s10 = inlined_call_operand.hbm [shape: f32[128,128], index: 10, kind: output, shape index: {0}]   ;;  %s3511_s11 = inlined_call_operand.hbm [shape: bf16[2,128,128], index: 11, kind: output, shape index: {1}]  }
   0x1   :  { %3547 = sst [smem:[#allocation49_spill]] %s3500_s0 }
   0x2   :  { %3548 = sst [smem:[#allocation50_spill]] %s3501_s1 }
   0x3   :  { %3549 = sst [smem:[#allocation51_spill]] %s3502_s2 }
   0x4   :  { %3550 = sst [smem:[#allocation52_spill]] %s3503_s3 }
   0x5   :  { %3551 = sst [smem:[#allocation53_spill]] %s3504_s4 }
   0x6   :  { %3552 = sst [smem:[#allocation54_spill]] %s3505_s5 }
   0x7   :  { %3553 = sst [smem:[#allocation55_spill]] %s3506_s6 }
   0x8   :  { %3554 = sst [smem:[#allocation56_spill]] %s3507_s7 }
   0x9   :  { %3555 = sst [smem:[#allocation57_spill]] %s3508_s8 }
   0xa   :  { %3556 = sst [smem:[#allocation58_spill]] %s3509_s9 }
   0xb   :  { %3557 = sst [smem:[#allocation59_spill]] %s3510_s10 }
   0xc   :  { %3558 = sst [smem:[#allocation60_spill]] %s3511_s11 }
   0xd   :  { %17 = vsyncpa [#allocation9], 0 }
   0xe   :  { %18 = vsyncpa [#allocation12], 0 }
   0xf   :  { %19 = vsyncpa [#allocation10], 0 }
  0x10   :  { %20 = vsyncpa [#allocation15], 0 }
  0x11   :  { %21 = vsyncpa [#allocation7], 0 }
  0x12   :  { %23 = vsyncpa [#allocation7 + $0x1], 0 }
  0x13   :  { %24 = vsyncpa [#allocation18], 0 }
  0x14   :  { %26 = vsyncpa [#allocation18 + $0x1], 0 }
  0x15   :  { %27 = vsyncpa [#allocation8], 0 }
  0x16   :  { %28 = vsyncpa [#allocation22], 0 }
  0x17   :  { %30 = vsyncpa [#allocation22 + $0x1], 0  ;;  %s2727_s17 = smov 0   ;;  %s2729_s18 = smov 0  }
  0x18   :  { %s2731_s19 = smov 0   ;;  %s2733_s20 = smov 0  }
  0x19   :  { %s2735_s21 = smov 0   ;;  %s2737_s22 = smov 0  }
  0x1a   :  { %s2739_s23 = smov 0   ;;  %s2741_s24 = smov 0  }
  0x1b   :  { %s2743_s25 = smov 0   ;;  %s2745_s26 = smov 0  }
  0x1c   :  { %s2747_s27 = smov 0  }
  0x1d LB: > { %3559 = sst [smem:[#allocation36_spill]] %s2601_s17  ;;  %s1760_s28 = sadd.s32 4294967294, %s2641_s27   ;;  %s2641_s27 = sphi %s2747_s27, %s36_s27   ;;  %s2637_s26 = sphi %s2745_s26, %s3655_s26   ;;  %s2633_s25 = sphi %s2743_s25, %s3654_s25   ;;  %s2629_s24 = sphi %s2741_s24, %s3653_s24   ;;  %s2625_s23 = sphi %s2739_s23, %s3652_s23   ;;  %s2621_s22 = sphi %s2737_s22, %s3651_s22   ;;  %s2617_s21 = sphi %s2735_s21, %s3650_s21   ;;  %s2613_s20 = sphi %s2733_s20, %s3645_s20   ;;  %s2609_s19 = sphi %s2731_s19, %s3649_s19   ;;  %s2605_s18 = sphi %s2729_s18, %s3648_s18   ;;  %s2601_s17 = sphi %s2727_s17, %s3644_s17  }
  0x1e   : > { %3560 = sst [smem:[#allocation37_spill]] %s2605_s18  ;;  %p3518_p0 = scmp.eq.s32.totalorder %s2641_s27, 0 }
  0x1f   : > { %3561 = sst [smem:[#allocation38_spill]] %s2617_s21  ;;  %p3519_p1 = scmp.ne.s32.totalorder %s2609_s19, %s2605_s18 }
  0x20   : > { %3562 = sst [smem:[#allocation39_spill]] %s2625_s23  ;;  %p3520_p2 = scmp.ne.s32.totalorder %s2605_s18, %s2601_s17 }
  0x21   : > { %3563 = sst [smem:[#allocation40_spill]] %s2629_s24  ;;  %p309_p3 = scmp.eq.s32.totalorder %s1760_s28, 3 }
  0x22   : > { %p176_p4 = por %p3519_p1, %p3518_p0  ;;  %p3517_p5 = scmp.lt.s32.totalorder %s2641_s27, 4 }
  0x23   : > { %p2798_p6 = por %p309_p3, %p3520_p2  ;;  %s392_s12 = sand.u32 1, %s2641_s27  }
  0x24   : > { %s394_s13 = sand.u32 1, %s2609_s19   ;;  %s3515_s15 = sshll.u32 %s2637_s26, 11 }
  0x25   : > { %s3564_s30 = scalar_select %p2798_p6, 1, 0 }
  0x26   : > { %s2804_s14 = sshll.u32 %s394_s13, 7  ;;  %s3566_s6 = sld [smem:[#allocation55_spill]] }
  0x27   : > { %3565 = sst [smem:[#allocation41_spill]] %s3564_s30  ;;  %s396_s11 = scalar_lea.vmem [#allocation17], %s2804_s14 }
  0x28   : > { %s403_s10 = sshll.u32 %s396_s11, 4  ;;  %p2817_p7 = pnand %p3517_p5, %p176_p4  ;;  %s2821_s10 = int_to_ptr.vmem [resolvable:$true] %s403_s10 }
  0x29   : > { %s2823_s13 = scalar_lea.sflag [#allocation18], %s392_s12 }
  0x2a   : > { %p3532_p9 = pneg %p2817_p7 }
  0x2c   : > { %s2812_s28 = scalar_lea.hbm %s3566_s6, %s3515_s15  ;;  %s2292_s15 = scalar_lea.hbm %s3566_s6, 4096 }
  0x2d   : > { %s2287_s29 = scalar_lea.hbm %s2812_s28, 2048  ;;  %p2293_p12 = scmp.lt.u32.totalorder %s2812_s28, %s3566_s6 }
  0x2e   : > { %p2288_p8 = scmp.ne.s32.totalorder %s2812_s28, %s2287_s29  ;;  %p2294_p13 = scmp.lt.u32.totalorder %s2292_s15, %s2287_s29 }
  0x2f   : > { %p2296_p4 = scmp.lt.u32.totalorder %s2287_s29, %s2812_s28 }
  0x30   : > { %p2290_p10 = pnand %p3532_p9, %p2288_p8  ;;  %p2295_p3 = por %p2294_p13, %p2293_p12 }
  0x32   : > { %p2291_p11 = pneg %p2290_p10  ;;  %p2297_p5 = por %p2296_p4, %p2295_p3 }
  0x34   : > { %p2298_p0 = pnand %p2297_p5, %p2291_p11 }
  0x36   : > { %2301 = shalt.err (!%p2298_p0)
}
  0x37   : > { %s2302_s12 = scalar_lea.vmem %s2821_s10, 2048  ;;  %s2647_s11 = smov [#allocation17]  }
  0x38   : > { %p2303_p8 = scmp.ne.s32.totalorder %s2821_s10, %s2302_s12  ;;  %s2307_s16 = sshll.u32 %s2647_s11, 4  ;;  %s2308_s16 = int_to_ptr.vmem [resolvable:$false] %s2307_s16 }
  0x39   : > { %s2309_s4 = scalar_lea.vmem %s2308_s16, 4096  ;;  %p2310_p2 = scmp.lt.s32.totalorder %s2821_s10, %s2308_s16 }
  0x3a   : > { %p2305_p10 = pnand %p2303_p8, %p3532_p9  ;;  %p2311_p12 = scmp.lt.s32.totalorder %s2309_s4, %s2302_s12 }
  0x3c   : > { %p2306_p1 = pneg %p2305_p10  ;;  %p2312_p13 = por %p2311_p12, %p2310_p2 }
  0x3e   : > { %p2313_p3 = pnand %p2312_p13, %p2306_p1 }
  0x40   : > { %2316 = shalt.err (!%p2313_p3)
}
  0x41   : > { %s2648_s7 = smov 128   ;;  %s2649_s15 = smov 8  }
  0x42   : > { %2115 = dma.hbm_to_vmem [thread:$0]  (!%p2817_p7), %s2812_s28, 2048, %s2821_s10, %s2823_s13, %s2648_s7, %s2648_s7, %s2649_s15  }
  0x43   : > { %s3568_s12 = sshll.u32 %s2637_s26, 11  ;;  %s3569_s8 = sld [smem:[#allocation57_spill]] }
  0x44   : > { %s424_s6 = scalar_lea.vmem [#allocation19], %s2804_s14  ;;  %s2863_s23 = sadd.s32 4294967295, %s2641_s27  }
  0x45   : > { %s2860_s9 = sshll.u32 %s424_s6, 4  ;;  %3570 = sst [smem:[#allocation42_spill]] %s2863_s23  ;;  %s3021_s9 = int_to_ptr.vmem [resolvable:$true] %s2860_s9 }
  0x46   : > { %p1761_p0 = scmp.ge.s32.totalorder %s2641_s27, 1  ;;  %p3533_p1 = scmp.eq.s32.totalorder %s2863_s23, 0 }
  0x47   : > { %p3526_p2 = scmp.eq.s32.totalorder %s2863_s23, 3  ;;  %p316_p5 = scmp.lt.s32.totalorder %s2641_s27, 5 }
  0x48   : > { %p3571_p11 = scmp.ne.s32.totalorder %s2605_s18, %s2601_s17  ;;  %p3574_p8 = scmp.ne.s32.totalorder %s2609_s19, %s2605_s18 }
  0x49   : > { %s2857_s4 = scalar_lea.hbm %s3569_s8, %s3568_s12  ;;  %p2887_p12 = pnand %p1761_p0, %p316_p5 }
  0x4a   : > { %p2874_p4 = por %p3571_p11, %p3533_p1  ;;  %p2883_p10 = por %p3526_p2, %p3574_p8 }
  0x4b   : > { %s3577_s14 = scalar_select %p2887_p12, 1, 0 }
  0x4c   : > { %s3572_s10 = scalar_select %p2874_p4, 1, 0 }
  0x4d   : > { %s3575_s6 = scalar_select %p2883_p10, 1, 0 }
  0x4e   : > { %3573 = sst [smem:[#allocation43_spill]] %s3572_s10  ;;  %s3579_s2 = sld [smem:[#allocation51_spill]] }
  0x4f   : > { %3576 = sst [smem:[#allocation44_spill]] %s3575_s6  ;;  %p2096_p13 = pneg %p2887_p12 }
  0x50   : > { %3578 = sst [smem:[#allocation45_spill]] %s3577_s14  ;;  %s3580_s3 = sld [smem:[#allocation52_spill]] }
  0x51   : > { %p2903_p3 = pnand %p2096_p13, %p3533_p1  ;;  %s3582_s0 = sld [smem:[#allocation49_spill]] }
  0x53   : > { %p2319_p5 = pneg %p2903_p3 }
  0x54   : > { %s347_s15 = sshll.u32 %s3579_s2, 4  ;;  %s2896_s15 = int_to_ptr.vmem [resolvable:$true] %s347_s15 }
  0x56   : > { %s358_s16 = sshll.u32 %s3580_s3, 4  ;;  %s2907_s16 = int_to_ptr.vmem [resolvable:$true] %s358_s16 }
  0x57   : > { %s2317_s2 = scalar_lea.hbm %s3582_s0, 16 }
  0x58   : > { %p2318_p0 = scmp.ne.s32.totalorder %s3582_s0, %s2317_s2  ;;  %p2324_p13 = scmp.lt.u32.totalorder %s2317_s2, %s3582_s0 }
  0x5a   : > { %p2320_p11 = pnand %p2319_p5, %p2318_p0 }
  0x5c   : > { %p2321_p8 = pneg %p2320_p11 }
  0x5e   : > { %p2326_p2 = pnand %p2324_p13, %p2321_p8 }
  0x60   : > { %2329 = shalt.err (!%p2326_p2)
}
  0x61   : > { %s2650_s3 = smov [#allocation6]   ;;  %s3583_s1 = sld [smem:[#allocation50_spill]] }
  0x62   : > { %2099 = dma.hbm_to_smem (!%p2903_p3), %s3582_s0, 16, %s2650_s3, [#allocation9]  }
  0x67   : > { %s2330_s24 = scalar_lea.hbm %s3583_s1, 64 }
  0x68   : > { %p2331_p0 = scmp.ne.s32.totalorder %s3583_s1, %s2330_s24  ;;  %p2337_p8 = scmp.lt.u32.totalorder %s2330_s24, %s3583_s1 }
  0x6a   : > { %p2333_p11 = pnand %p2331_p0, %p2319_p5 }
  0x6c   : > { %p2334_p2 = pneg %p2333_p11 }
  0x6e   : > { %p2339_p13 = pnand %p2337_p8, %p2334_p2 }
  0x70   : > { %2342 = shalt.err (!%p2339_p13)
}
  0x71   : > { %s2651_s11 = smov [#allocation11]   ;;  %s2343_s18 = scalar_lea.vmem %s2896_s15, 64 }
  0x72   : > { %2102 = dma.hbm_to_smem (!%p2903_p3), %s3583_s1, 64, %s2651_s11, [#allocation12]  }
  0x73   : > { %p2344_p0 = scmp.ne.s32.totalorder %s2896_s15, %s2343_s18  ;;  %p2351_p2 = scmp.lt.s32.totalorder %s2896_s15, %s2896_s15 }
  0x74   : > { %p2352_p8 = scmp.lt.s32.totalorder %s2343_s18, %s2343_s18 }
  0x75   : > { %p2346_p11 = pnand %p2344_p0, %p2319_p5 }
  0x76   : > { %p2353_p13 = por %p2352_p8, %p2351_p2 }
  0x77   : > { %p2347_p9 = pneg %p2346_p11 }
  0x79   : > { %p2354_p1 = pnand %p2353_p13, %p2347_p9 }
  0x7b   : > { %2357 = shalt.err (!%p2354_p1)
}
  0x7c   : > { %s2652_s24 = smov [#allocation13]   ;;  %s2358_s10 = scalar_lea.vmem %s2907_s16, 16 }
  0x7d   : > { %2105 = dma.vmem_to_smem (!%p2903_p3), %s2896_s15, 64, %s2652_s24, [#allocation10]  }
  0x7e   : > { %p2359_p6 = scmp.ne.s32.totalorder %s2907_s16, %s2358_s10  ;;  %p2366_p10 = scmp.lt.s32.totalorder %s2907_s16, %s2907_s16 }
  0x7f   : > { %p2367_p2 = scmp.lt.s32.totalorder %s2358_s10, %s2358_s10 }
  0x80   : > { %p2361_p0 = pnand %p2359_p6, %p2319_p5 }
  0x81   : > { %p2368_p9 = por %p2367_p2, %p2366_p10 }
  0x82   : > { %p2362_p11 = pneg %p2361_p0 }
  0x84   : > { %p2369_p1 = pnand %p2368_p9, %p2362_p11 }
  0x86   : > { %2372 = shalt.err (!%p2369_p1)
}
  0x87   : > { %s2653_s7 = smov [#allocation14]   ;;  %s45_s15 = sadd.s32 1, %s2633_s25 }
  0x88   : > { %2108 = dma.vmem_to_smem (!%p2903_p3), %s2907_s16, 16, %s2653_s7, [#allocation15]  }
  0x89   : > { %s141_s17 = sadd.s32 1, %s2621_s22  ;;  %p46_p6 = scmp.ge.s32.totalorder %s45_s15, 2 }
  0x8a   : > { %p148_p10 = scmp.ne.s32.totalorder %s2621_s22, %s2617_s21  ;;  %p154_p5 = scmp.ne.s32.totalorder %s2617_s21, %s2613_s20 }
  0x8b   : > { %s369_s29 = sand.u32 1, %s2621_s22   ;;  %s3657_s15 = smov (%p46_p6, %s45_s15), 0 }
  0x8c   : > { %3584 = sst [smem:[#allocation46_spill]] %s3657_s15  ;;  %s3585_s6 = sadd.s32 1, %s2637_s26 }
  0x8d   : > { %s3659_s6 = smov (!%p46_p6, %s3585_s6), %s2637_s26  ;;  %s137_s2 = ssub.s32 %s2633_s25, %s3657_s15 }
  0x8e   : > { %p3586_p8 = scmp.eq.s32.totalorder %s2641_s27, 0  ;;  %p50_p3 = scmp.ge.s32.totalorder %s3659_s6, 2 }
  0x8f   : > { %p3588_p0 = scmp.eq.s32.totalorder %s2863_s23, 0  ;;  %s1767_s20 = sshll.u32 %s369_s29, 7 }
  0x90   : > { %p2981_p13 = por %p3586_p8, %p148_p10  ;;  %s3661_s6 = smov (%p50_p3, %s3659_s6), 0 }
  0x91   : > { %p2987_p11 = por %p3588_p0, %p154_p5  ;;  %3591 = sst [smem:[#allocation48_spill]] %s3661_s6 }
  0x92   : > { %s1768_s11 = sshll.u32 %s2633_s25, 5  ;;  %s136_s3 = ssub.s32 %s2637_s26, %s3661_s6 }
  0x93   : > { %s3589_s12 = scalar_select %p2987_p11, 1, 0 }
  0x94   : > { %s1769_s28 = sshll.u32 %s2637_s26, 6  ;;  %s138_s18 = sor.u32 %s137_s2, %s136_s3 }
  0x95   : > { %3590 = sst [smem:[#allocation47_spill]] %s3589_s12  ;;  %p165_p2 = scmp.eq.s32.totalorder %s136_s3, 0 }
  0x96   : > { %p139_p9 = scmp.eq.s32.totalorder %s138_s18, 0  ;;  %s379_s24 = sadd.s32 %s1769_s28, %s1768_s11 }
  0x97   : > { %s3592_s10 = sadd.s32 1, %s2609_s19  ;;  %s1770_s1 = sshll.u32 %s379_s24, 6 }
  0x98   : > { %s3000_s7 = scalar_select %p165_p2, %s2609_s19, %s3592_s10  }
  0x99   : > { %s3003_s0 = scalar_select %p139_p9, %s2621_s22, %s141_s17  }
  0x9a   : > { %s373_s15 = scalar_lea.vmem [#allocation16], %s1767_s20  ;;  %s3593_s5 = sld [smem:[#allocation54_spill]] }
  0x9b   : > { %s382_s12 = sshll.u32 %s373_s15, 4  ;;  %p3594_p1 = scmp.lt.s32.totalorder %s2641_s27, 4  ;;  %s3010_s12 = int_to_ptr.vmem [resolvable:$true] %s382_s12 }
  0x9c   : > { %s3023_s15 = scalar_lea.sflag [#allocation7], %s369_s29 }
  0x9d   : > { %p3016_p6 = pnand %p3594_p1, %p2981_p13 }
  0x9f   : > { %p2375_p5 = pneg %p3016_p6 }
  0xa0   : > { %s3008_s14 = scalar_lea.hbm %s3593_s5, %s1770_s1  ;;  %s2378_s17 = scalar_lea.hbm %s3593_s5, 8192 }
  0xa1   : > { %s2373_s1 = scalar_lea.hbm %s3008_s14, 2048  ;;  %p2379_p13 = scmp.lt.u32.totalorder %s3008_s14, %s3593_s5 }
  0xa2   : > { %p2374_p10 = scmp.ne.s32.totalorder %s3008_s14, %s2373_s1  ;;  %p2380_p0 = scmp.lt.u32.totalorder %s2378_s17, %s2373_s1 }
  0xa3   : > { %p2382_p9 = scmp.lt.u32.totalorder %s2373_s1, %s3008_s14 }
  0xa4   : > { %p2376_p8 = pnand %p2375_p5, %p2374_p10  ;;  %p2381_p2 = por %p2380_p0, %p2379_p13 }
  0xa6   : > { %p2377_p3 = pneg %p2376_p8  ;;  %p2383_p1 = por %p2382_p9, %p2381_p2 }
  0xa8   : > { %p2384_p4 = pnand %p2383_p1, %p2377_p3 }
  0xaa   : > { %2387 = shalt.err (!%p2384_p4)
}
  0xab   : > { %s2388_s29 = scalar_lea.vmem %s3010_s12, 2048  ;;  %s2654_s11 = smov [#allocation16]  }
  0xac   : > { %p2389_p10 = scmp.ne.s32.totalorder %s3010_s12, %s2388_s29  ;;  %s2393_s3 = sshll.u32 %s2654_s11, 4  ;;  %s2394_s3 = int_to_ptr.vmem [resolvable:$false] %s2393_s3 }
  0xad   : > { %s2395_s28 = scalar_lea.vmem %s2394_s3, 4096  ;;  %p2396_p12 = scmp.lt.s32.totalorder %s3010_s12, %s2394_s3 }
  0xae   : > { %p2391_p8 = pnand %p2389_p10, %p2375_p5  ;;  %p2397_p13 = scmp.lt.s32.totalorder %s2395_s28, %s2388_s29 }
  0xb0   : > { %p2392_p11 = pneg %p2391_p8  ;;  %p2398_p0 = por %p2397_p13, %p2396_p12 }
  0xb2   : > { %p2399_p2 = pnand %p2398_p0, %p2392_p11 }
  0xb4   : > { %2402 = shalt.err (!%p2399_p2)
}
  0xb5   : > { %s2655_s18 = smov 64   ;;  %s2656_s24 = smov 4  }
  0xb6   : > { %2112 = dma.hbm_to_vmem [thread:$0]  (!%p3016_p6), %s3008_s14, 2048, %s3010_s12, %s3023_s15, %s2655_s18, %s2655_s18, %s2656_s24  }
  0xb7   : > { %s2403_s10 = scalar_lea.hbm %s2857_s4, 2048  ;;  %p3596_p12 = pneg %p2817_p7 }
  0xb8   : > { %p2404_p4 = scmp.ne.s32.totalorder %s2857_s4, %s2403_s10  ;;  %s2408_s23 = scalar_lea.hbm %s3569_s8, 4096 }
  0xb9   : > { %p2409_p3 = scmp.lt.u32.totalorder %s2857_s4, %s3569_s8  ;;  %p2410_p9 = scmp.lt.u32.totalorder %s2408_s23, %s2403_s10 }
  0xba   : > { %p2406_p11 = pnand %p2404_p4, %p3596_p12  ;;  %p2412_p10 = scmp.lt.u32.totalorder %s2403_s10, %s2857_s4 }
  0xbb   : > { %p2411_p1 = por %p2410_p9, %p2409_p3 }
  0xbc   : > { %p2407_p5 = pneg %p2406_p11 }
  0xbd   : > { %p2413_p8 = por %p2412_p10, %p2411_p1 }
  0xbf   : > { %p2414_p13 = pnand %p2413_p8, %p2407_p5 }
  0xc1   : > { %2417 = shalt.err (!%p2414_p13)
}
  0xc2   : > { %s2418_s14 = scalar_lea.vmem %s3021_s9, 2048  ;;  %p3597_p0 = pmov %p3596_p12 }
  0xc3   : > { %p2419_p6 = scmp.ne.s32.totalorder %s3021_s9, %s2418_s14  ;;  %s2657_s12 = smov [#allocation19]  }
  0xc4   : > { %s2423_s2 = sshll.u32 %s2657_s12, 4  ;;  %s2424_s2 = int_to_ptr.vmem [resolvable:$false] %s2423_s2 }
  0xc5   : > { %p2421_p2 = pnand %p2419_p6, %p3597_p0  ;;  %s2425_s15 = scalar_lea.vmem %s2424_s2, 4096 }
  0xc6   : > { %p2426_p12 = scmp.lt.s32.totalorder %s3021_s9, %s2424_s2  ;;  %p2427_p11 = scmp.lt.s32.totalorder %s2425_s15, %s2418_s14 }
  0xc7   : > { %p2422_p4 = pneg %p2421_p2 }
  0xc8   : > { %p2428_p3 = por %p2427_p11, %p2426_p12 }
  0xca   : > { %p2429_p9 = pnand %p2428_p3, %p2422_p4 }
  0xcc   : > { %2432 = shalt.err (!%p2429_p9)
}
  0xcd   : > { %2118 = dma.hbm_to_vmem [thread:$0]  (!%p2817_p7), %s2857_s4, 2048, %s3021_s9, %s2823_s13, %s2655_s18, %s2655_s18, %s2656_s24  }
  0xce   : > { %s3598_s20 = sld [smem:[#allocation45_spill]] }
  0xd4   : > { %p3599_p5 = scmp.ne.s32.totalorder %s3598_s20, 0 }
  0xd5   : > { %s3600_s29 = sld [smem:[#allocation42_spill]] (!%p3599_p5) }
  0xd6   : > { %449 = sbr.rel (%p3599_p5) target bundleno = 946 (0x3b2), region = 56 }
  0xdb   : > { %p3601_p1 = scmp.eq.s32.totalorder (!%p3599_p5), %s3600_s29, 0 }
  0xdd   : > { %2564 = dma.done.wait (%p3601_p1), [#allocation9], 16   ;;  %p3602_p10 = pmov %p3601_p1 }
  0xde   : > { %p3603_p8 = pmov %p3601_p1 }
  0xdf   : > { %2566 = vsyncadd (%p3602_p10), [#allocation9], 4294967280 }
  0xe0   : > { %2568 = dma.done.wait (%p3603_p8), [#allocation12], 64   ;;  %p3604_p13 = pmov %p3601_p1 }
  0xe1   : > { %p3605_p6 = pmov %p3601_p1 }
  0xe2   : > { %2570 = vsyncadd (%p3604_p13), [#allocation12], 4294967232 }
  0xe3   : > { %2572 = dma.done.wait (%p3605_p6), [#allocation10], 64   ;;  %p3606_p7 = pmov %p3601_p1 }
  0xe4   : > { %p3607_p0 = pmov %p3601_p1 }
  0xe5   : > { %2574 = vsyncadd (%p3606_p7), [#allocation10], 4294967232 }
  0xe6   : > { %2576 = dma.done.wait (%p3607_p0), [#allocation15], 16   ;;  %p3608_p2 = pmov %p3607_p0 }
  0xe7   : > { %s3609_s9 = sld [smem:[#allocation38_spill]]  ;;  %s3610_s30 = sld [smem:[#allocation47_spill]] }
  0xe8   : > { %2578 = vsyncadd (%p3608_p2), [#allocation15], 4294967280 }
  0xed   : > { %s467_s13 = sand.u32 1, %s3609_s9   ;;  %p3611_p4 = scmp.ne.s32.totalorder %s3610_s30, 0 }
  0xee   : > { %s1782_s4 = sshll.u32 %s467_s13, 7  ;;  %s468_s11 = scalar_lea.sflag [#allocation7], %s467_s13 }
  0xef   : > { %s3100_s3 = scalar_lea.vmem [#allocation16], %s1782_s4 }
  0xf0   : > { %2580 = dma.done.wait (%p3611_p4), %s468_s11, 2048  }
  0xf1   : > { %2582 = vsyncadd (%p3611_p4), %s468_s11, 4294965248  ;;  %s3612_s28 = sld [smem:[#allocation37_spill]]  ;;  %s3613_s18 = sld [smem:[#allocation43_spill]] }
  0xf2   : > { %s476_s24 = sand.u32 1, %s3600_s29  }
  0xf3   : > { %s477_s21 = scalar_lea.sflag [#allocation18], %s476_s24 }
  0xf7   : > { %s3108_s10 = sand.u32 1, %s3612_s28   ;;  %p3614_p12 = scmp.ne.s32.totalorder %s3613_s18, 0 }
  0xf8   : > { %s1783_s1 = sshll.u32 %s3108_s10, 7 }
  0xf9   : > { %s3111_s23 = scalar_lea.vmem [#allocation17], %s1783_s1 }
  0xfa   : > { %2584 = dma.done.wait (%p3614_p12), %s477_s21, 4096  }
  0xfb   : > { %2586 = vsyncadd (%p3614_p12), %s477_s21, 4294963200  ;;  %s3117_s17 = scalar_lea.vmem [#allocation19], %s1783_s1 }
  0xfc   : > { %494 = sfence }
  0xfd   : > { %s3615_s16 = sld [smem:[#allocation40_spill]]  ;;  %s3616_s14 = sld [smem:[#allocation39_spill]] }
  0xfe   : > { %s3121_s2 = sld [smem:[#allocation6]]  ;;  %s3126_s20 = sld [smem:[#allocation6 + $0x1]] }
  0xff   : > { %s3617_s13 = sld [smem:[#allocation58_spill]]  ;;  %s3618_s18 = sld [smem:[#allocation56_spill]] }
 0x100   : > { %s2658_s21 = smov [#allocation2]   ;;  %s3620_s8 = sld [smem:[#allocation53_spill]] }
 0x101   : > { %s568_s12 = sshll.u32 %s2658_s21, 4  ;;  %s569_s12 = int_to_ptr.vmem [resolvable:$true] %s568_s12 }
 0x103   : > { %p545_p11 = scmp.lt.s32.totalorder %s3615_s16, 1  ;;  %p555_p3 = scmp.eq.s32.totalorder %s3615_s16, 0 }
 0x104   : > { %p556_p9 = scmp.eq.s32.totalorder %s3616_s14, 0 }
 0x105   : > { %s3124_s15 = scalar_select %p545_p11, %s3615_s16, 1 }
 0x106   : > { %p3140_p5 = pnand %p556_p9, %p555_p3  ;;  %s2433_s6 = scalar_lea.hbm %s3620_s8, 2048 }
 0x107   : > { %s1786_s29 = sshll.u32 %s3124_s15, 1  ;;  %s551_s4 = scalar_lea.vmem %s3617_s13, %s3124_s15 }
 0x108   : > { %s3137_s24 = scalar_lea.vmem %s3618_s18, %s1786_s29  ;;  %p2434_p1 = scmp.ne.s32.totalorder %s3620_s8, %s2433_s6 }
 0x109   : > { %p2435_p10 = pneg %p3140_p5  ;;  %p2440_p6 = scmp.lt.u32.totalorder %s2433_s6, %s3620_s8 }
 0x10b   : > { %p2436_p8 = pnand %p2435_p10, %p2434_p1 }
 0x10d   : > { %p2437_p13 = pneg %p2436_p8 }
 0x10f   : > { %p2442_p7 = pnand %p2440_p6, %p2437_p13 }
 0x111   : > { %2445 = shalt.err (!%p2442_p7)  }
 0x112   : > { %s2446_s11 = scalar_lea.vmem %s569_s12, 2048  ;;  %p2454_p12 = scmp.lt.s32.totalorder %s569_s12, %s569_s12 }
 0x113   : > { %p2447_p0 = scmp.ne.s32.totalorder %s569_s12, %s2446_s11  ;;  %p2455_p11 = scmp.lt.s32.totalorder %s2446_s11, %s2446_s11 }
 0x115   : > { %p2449_p2 = pnand %p2447_p0, %p2435_p10  ;;  %p2456_p3 = por %p2455_p11, %p2454_p12 }
 0x117   : > { %p2450_p4 = pneg %p2449_p2 }
 0x119   : > { %p2457_p9 = pnand %p2456_p3, %p2450_p4 }
 0x11b   : > { %2460 = shalt.err (!%p2457_p9)  }
 0x11c   : > { %2088 = dma.hbm_to_vmem [thread:$0]  (!%p3140_p5), %s3620_s8, 2048, %s569_s12, [#allocation5] }
 0x11d   : > { %s3621_s6 = sshll.u32 %s3108_s10, 6 }
 0x11e   : > { %s3162_s18 = scalar_lea.vmem [#allocation21], %s3621_s6 }
 0x11f   : > { %2588 = dma.done.wait (!%p3140_p5), [#allocation5], 2048 }
 0x120   : > { %2590 = vsyncadd (!%p3140_p5), [#allocation5], 4294965248  ;;  %p1788_p1 = scmp.ne.s32.totalorder %s3616_s14, 0 }
 0x121   : > { %v2659_v0 = vmov (!%p1788_p1), 0.0  }
 0x122   : > { %577 = sbr.rel (%p1788_p1) target bundleno = 298 (0x12a), region = 96  ;;  %578 = vst [vmem:[#allocation3] sm:$0xff] (!%p1788_p1), %v2659_v0  ;;  %579 = vst [vmem:[#allocation3 + $0x8] sm:$0xff] (!%p1788_p1), %v2659_v0 }
 0x123   : > { %580 = vst [vmem:[#allocation3 + $0x10] sm:$0xff] (!%p1788_p1), %v2659_v0  ;;  %581 = vst [vmem:[#allocation3 + $0x18] sm:$0xff] (!%p1788_p1), %v2659_v0 }
 0x124   : > { %582 = vst [vmem:[#allocation3 + $0x20] sm:$0xff] (!%p1788_p1), %v2659_v0  ;;  %583 = vst [vmem:[#allocation3 + $0x28] sm:$0xff] (!%p1788_p1), %v2659_v0 }
 0x125   : > { %584 = vst [vmem:[#allocation3 + $0x30] sm:$0xff] (!%p1788_p1), %v2659_v0  ;;  %585 = vst [vmem:[#allocation3 + $0x38] sm:$0xff] (!%p1788_p1), %v2659_v0 }
 0x126   : > { %586 = vst [vmem:[#allocation3 + $0x40] sm:$0xff] (!%p1788_p1), %v2659_v0  ;;  %587 = vst [vmem:[#allocation3 + $0x48] sm:$0xff] (!%p1788_p1), %v2659_v0 }
 0x127   : > { %588 = vst [vmem:[#allocation3 + $0x50] sm:$0xff] (!%p1788_p1), %v2659_v0  ;;  %589 = vst [vmem:[#allocation3 + $0x58] sm:$0xff] (!%p1788_p1), %v2659_v0 }
 0x128   : > { %590 = vst [vmem:[#allocation3 + $0x60] sm:$0xff] (!%p1788_p1), %v2659_v0  ;;  %591 = vst [vmem:[#allocation3 + $0x68] sm:$0xff] (!%p1788_p1), %v2659_v0 }
 0x129   : > { %592 = vst [vmem:[#allocation3 + $0x70] sm:$0xff] %v2659_v0  ;;  %593 = vst [vmem:[#allocation3 + $0x78] sm:$0xff] %v2659_v0 }
 0x12a PF: > { %s3622_s14 = sld [smem:[#allocation39_spill]]  ;;  %v1876_v1 = vld [vmem:[%s3100_s3] sm:$0xff]   ;;  %v1979_v2 = vld [vmem:[%s3100_s3 + $0x8] sm:$0xff]   ;;  %v1980_v3 = vld [vmem:[%s3100_s3 + $0x10] sm:$0xff]  }
 0x12b   : > { %v1877_v4 = vunpack.c.l.bf16 %v1876_v1  ;;  %v1878_v5 = vunpack.c.h.bf16 %v1876_v1  ;;  %v1881_v6 = vunpack.c.l.bf16 %v1979_v2  ;;  %v1882_v7 = vunpack.c.h.bf16 %v1979_v2  ;;  %v1981_v8 = vld [vmem:[%s3100_s3 + $0x18] sm:$0xff]   ;;  %v1982_v9 = vld [vmem:[%s3100_s3 + $0x20] sm:$0xff]   ;;  %v1983_v10 = vld [vmem:[%s3100_s3 + $0x28] sm:$0xff]  }
 0x12c   : > { %v1885_v11 = vunpack.c.l.bf16 %v1980_v3  ;;  %v1886_v12 = vunpack.c.h.bf16 %v1980_v3  ;;  %v1889_v13 = vunpack.c.l.bf16 %v1981_v8  ;;  %v1890_v14 = vunpack.c.h.bf16 %v1981_v8  ;;  %v1984_v15 = vld [vmem:[%s3100_s3 + $0x30] sm:$0xff]   ;;  %v1985_v16 = vld [vmem:[%s3100_s3 + $0x38] sm:$0xff]   ;;  %v1986_v17 = vld [vmem:[%s3100_s3 + $0x40] sm:$0xff]  }
 0x12d   : > { %658 = vst [vmem:[#allocation4] sm:$0xff] %v1877_v4  ;;  %659 = vst [vmem:[#allocation4 + $0x8] sm:$0xff] %v1878_v5  ;;  %v1893_v18 = vunpack.c.l.bf16 %v1982_v9  ;;  %v1894_v19 = vunpack.c.h.bf16 %v1982_v9  ;;  %v1897_v20 = vunpack.c.l.bf16 %v1983_v10  ;;  %v1898_v21 = vunpack.c.h.bf16 %v1983_v10  ;;  %v1987_v22 = vld [vmem:[%s3100_s3 + $0x48] sm:$0xff]   ;;  %v1988_v23 = vld [vmem:[%s3100_s3 + $0x50] sm:$0xff]  }
 0x12e   : > { %660 = vst [vmem:[#allocation4 + $0x10] sm:$0xff] %v1881_v6  ;;  %661 = vst [vmem:[#allocation4 + $0x18] sm:$0xff] %v1882_v7  ;;  %v1989_v24 = vld [vmem:[%s3100_s3 + $0x58] sm:$0xff]   ;;  %v1901_v25 = vunpack.c.l.bf16 %v1984_v15  ;;  %v1902_v26 = vunpack.c.h.bf16 %v1984_v15  ;;  %v1905_v27 = vunpack.c.l.bf16 %v1985_v16  ;;  %v1906_v28 = vunpack.c.h.bf16 %v1985_v16  ;;  %v1990_v29 = vld [vmem:[%s3100_s3 + $0x60] sm:$0xff]  }
 0x12f   : > { %662 = vst [vmem:[#allocation4 + $0x20] sm:$0xff] %v1885_v11  ;;  %663 = vst [vmem:[#allocation4 + $0x28] sm:$0xff] %v1886_v12  ;;  %v1991_v30 = vld [vmem:[%s3100_s3 + $0x68] sm:$0xff]   ;;  %v1909_v31 = vunpack.c.l.bf16 %v1986_v17  ;;  %v1910_v32 = vunpack.c.h.bf16 %v1986_v17  ;;  %v1913_v33 = vunpack.c.l.bf16 %v1987_v22  ;;  %v1914_v34 = vunpack.c.h.bf16 %v1987_v22  ;;  %v1992_v35 = vld [vmem:[%s3100_s3 + $0x70] sm:$0xff]  }
 0x130   : > { %s1789_s12 = sshll.u32 %s3622_s14, 8  ;;  %664 = vst [vmem:[#allocation4 + $0x30] sm:$0xff] %v1889_v13  ;;  %665 = vst [vmem:[#allocation4 + $0x38] sm:$0xff] %v1890_v14  ;;  %v1993_v36 = vld [vmem:[%s3100_s3 + $0x78] sm:$0xff]   ;;  %v1917_v37 = vunpack.c.l.bf16 %v1988_v23  ;;  %v1918_v38 = vunpack.c.h.bf16 %v1988_v23  ;;  %v1921_v39 = vunpack.c.l.bf16 %v1989_v24  ;;  %v1922_v40 = vunpack.c.h.bf16 %v1989_v24 }
 0x131   : > { %s3179_s1 = ssub.s32 %s3121_s2, %s1789_s12  ;;  %666 = vst [vmem:[#allocation4 + $0x40] sm:$0xff] %v1893_v18  ;;  %667 = vst [vmem:[#allocation4 + $0x48] sm:$0xff] %v1894_v19  ;;  %v1925_v41 = vunpack.c.l.bf16 %v1990_v29  ;;  %v1926_v42 = vunpack.c.h.bf16 %v1990_v29  ;;  %v1929_v43 = vunpack.c.l.bf16 %v1991_v30  ;;  %v1930_v44 = vunpack.c.h.bf16 %v1991_v30 }
 0x132   : > { %p692_p5 = scmp.gt.s32.totalorder %s3179_s1, 0  ;;  %p1790_p10 = scmp.lt.s32.totalorder %s3179_s1, 256  ;;  %668 = vst [vmem:[#allocation4 + $0x50] sm:$0xff] %v1897_v20  ;;  %669 = vst [vmem:[#allocation4 + $0x58] sm:$0xff] %v1898_v21  ;;  %v1933_v45 = vunpack.c.l.bf16 %v1992_v35  ;;  %v1934_v46 = vunpack.c.h.bf16 %v1992_v35  ;;  %v1937_v47 = vunpack.c.l.bf16 %v1993_v36  ;;  %v1938_v48 = vunpack.c.h.bf16 %v1993_v36 }
 0x133   : > { %670 = vst [vmem:[#allocation4 + $0x60] sm:$0xff] %v1901_v25  ;;  %671 = vst [vmem:[#allocation4 + $0x68] sm:$0xff] %v1902_v26 }
 0x134   : > { %s693_s2 = scalar_select %p692_p5, %s3179_s1, 0  ;;  %672 = vst [vmem:[#allocation4 + $0x70] sm:$0xff] %v1905_v27  ;;  %673 = vst [vmem:[#allocation4 + $0x78] sm:$0xff] %v1906_v28 }
 0x135   : > { %674 = vst [vmem:[#allocation4 + $0x80] sm:$0xff] %v1909_v31  ;;  %675 = vst [vmem:[#allocation4 + $0x88] sm:$0xff] %v1910_v32 }
 0x136   : > { %s3663_s2 = smov (!%p1790_p10, %s693_s2), 256  ;;  %676 = vst [vmem:[#allocation4 + $0x90] sm:$0xff] %v1913_v33  ;;  %677 = vst [vmem:[#allocation4 + $0x98] sm:$0xff] %v1914_v34 }
 0x137   : > { %678 = vst [vmem:[#allocation4 + $0xa0] sm:$0xff] %v1917_v37  ;;  %679 = vst [vmem:[#allocation4 + $0xa8] sm:$0xff] %v1918_v38  ;;  %p1795_p8 = scmp.le.s32.totalorder %s3663_s2, 0 }
 0x138   : > { %680 = vst [vmem:[#allocation4 + $0xb0] sm:$0xff] %v1921_v39  ;;  %681 = vst [vmem:[#allocation4 + $0xb8] sm:$0xff] %v1922_v40  ;;  %s2643_s3 = smov (!%p1795_p8), 0  }
 0x139   : > { %682 = vst [vmem:[#allocation4 + $0xc0] sm:$0xff] %v1925_v41  ;;  %683 = vst [vmem:[#allocation4 + $0xc8] sm:$0xff] %v1926_v42  ;;  %1649 = sbr.rel (%p1795_p8) target bundleno = 336 (0x150), region = 178 }
 0x13a   : > { %684 = vst [vmem:[#allocation4 + $0xd0] sm:$0xff] %v1929_v43  ;;  %685 = vst [vmem:[#allocation4 + $0xd8] sm:$0xff] %v1930_v44 }
 0x13b   : > { %686 = vst [vmem:[#allocation4 + $0xe0] sm:$0xff] %v1933_v45  ;;  %687 = vst [vmem:[#allocation4 + $0xe8] sm:$0xff] %v1934_v46 }
 0x13c   : > { %688 = vst [vmem:[#allocation4 + $0xf0] sm:$0xff] %v1937_v47  ;;  %689 = vst [vmem:[#allocation4 + $0xf8] sm:$0xff] %v1938_v48 }
 0x140 LB: >> { %s702_s16 = sadd.s32 %s2645_s3, %s1789_s12  ;;  %s707_s29 = scalar_lea.vmem [#allocation4], %s2645_s3  ;;  %s2645_s3 = sphi %s2643_s3, %s699_s3  }
 0x141   : >> { %s703_s9 = sld [smem:[#allocation11 + %s702_s16]]  ;;  %s699_s3 = sadd.s32 1, %s2645_s3  }
 0x142   : >> { %s704_s30 = sld [smem:[#allocation13 + %s702_s16]]  ;;  %p698_p13 = scmp.ge.s32.totalorder %s699_s3, %s3663_s2 }
 0x143   : >> { %v708_v49 = vld [vmem:[%s707_s29] sm:$0x1] }
 0x147   : >> { %s705_s13 = scalar_lea.vmem [#allocation2], %s703_s9 }
 0x148   : >> { %v706_v50 = vld [vmem:[%s705_s13] sm:$0x1]  ;;  %s711_s11 = scalar_lea.vmem [#allocation3], %s704_s30 }
 0x149   : >> { %v709_v51 = vadd.f32 %v708_v49, %v706_v50  ;;  %v712_v52 = vld [vmem:[%s711_s11] sm:$0x1]  ;;  %701 = sbr.rel (!%p698_p13) target bundleno = 320 (0x140), region = 184 }
 0x14b   : >> { %v710_v53 = vmax.f32 %v709_v51, 0.0 }
 0x14d   : >> { %v713_v54 = vadd.f32 %v712_v52, %v710_v53 }
 0x14f   : >> { %714 = vst [vmem:[%s711_s11] sm:$0x1] %v713_v54 }
 0x150 PF: > { %s3624_s5 = sld [smem:[#allocation39_spill]] }
 0x156   : > { %p1796_p6 = scmp.ne.s32.totalorder %s3624_s5, 1 }
 0x157   : > { %s3625_s28 = sld [smem:[#allocation40_spill]] (!%p1796_p6)  ;;  %v2247_v55 = vld [vmem:[%s3111_s23 + $0x4] ss:$8 sps:$4 sm:$0xff] (!%p1796_p6)   ;;  %v2249_v56 = vld [vmem:[%s3111_s23] ss:$8 sps:$4 sm:$0xff] (!%p1796_p6)   ;;  %v2660_v57 = vmov (!%p1796_p6), 0  }
 0x158   : > { %718 = sbr.rel (%p1796_p6) target bundleno = 880 (0x370), region = 107  ;;  %968 = vmatprep.mubr.bf16.mxu0 (!%p1796_p6), %v2660_v57  ;;  %936 = vmatprep.subr.bf16.mxu0 (!%p1796_p6), %v2247_v55  ;;  %v2250_v58 = vld [vmem:[%s3111_s23 + $0x14] ss:$8 sps:$4 sm:$0xff] (!%p1796_p6)   ;;  %v2252_v59 = vld [vmem:[%s3111_s23 + $0x10] ss:$8 sps:$4 sm:$0xff] (!%p1796_p6)   ;;  %v772_v4 = vld [vmem:[#allocation2] sm:$0xff] (!%p1796_p6) }
 0x159   : > { %937 = vmatpush1.bf16.msra.mxu0 (!%p1796_p6), %v2249_v56  ;;  %v2253_v60 = vld [vmem:[%s3111_s23 + $0x24] ss:$8 sps:$4 sm:$0xff] (!%p1796_p6)   ;;  %v2255_v61 = vld [vmem:[%s3111_s23 + $0x20] ss:$8 sps:$4 sm:$0xff] (!%p1796_p6)   ;;  %v2256_v62 = vld [vmem:[%s3111_s23 + $0x34] ss:$8 sps:$4 sm:$0xff] (!%p1796_p6)  }
 0x15a   : > { %938 = vmatprep.subr.bf16.mxu0 (!%p1796_p6), %v2250_v58  ;;  %v2258_v63 = vld [vmem:[%s3111_s23 + $0x30] ss:$8 sps:$4 sm:$0xff] (!%p1796_p6)   ;;  %v2259_v0 = vld [vmem:[%s3111_s23 + $0x44] ss:$8 sps:$4 sm:$0xff] (!%p1796_p6)   ;;  %v2261_v1 = vld [vmem:[%s3111_s23 + $0x40] ss:$8 sps:$4 sm:$0xff] (!%p1796_p6)  }
 0x15b   : > { %v2262_v2 = vld [vmem:[%s3111_s23 + $0x54] ss:$8 sps:$4 sm:$0xff] (!%p1796_p6)   ;;  %v2264_v3 = vld [vmem:[%s3111_s23 + $0x50] ss:$8 sps:$4 sm:$0xff] (!%p1796_p6)   ;;  %v773_v5 = vld [vmem:[#allocation2 + $0x8] sm:$0xff] (!%p1796_p6) }
 0x15c   : > { %v2265_v7 = vld [vmem:[%s3111_s23 + $0x64] ss:$8 sps:$4 sm:$0xff] (!%p1796_p6)   ;;  %v2267_v8 = vld [vmem:[%s3111_s23 + $0x60] ss:$8 sps:$4 sm:$0xff] (!%p1796_p6)   ;;  %v2268_v11 = vld [vmem:[%s3111_s23 + $0x74] ss:$8 sps:$4 sm:$0xff] (!%p1796_p6)  }
 0x15d   : > { %939 = vmatpush1.bf16.msra.mxu0 (!%p1796_p6), %v2252_v59  ;;  %s720_s6 = sld [smem:[#allocation14 + %s3625_s28]] (!%p1796_p6)  ;;  %v805_v9 = vld [vmem:[#allocation3] sm:$0xff] (!%p1796_p6)  ;;  %v806_v10 = vld [vmem:[#allocation3 + $0x8] sm:$0xff] (!%p1796_p6)  ;;  %v2270_v17 = vld [vmem:[%s3111_s23 + $0x70] ss:$8 sps:$4 sm:$0xff] (!%p1796_p6)   ;;  %p719_p7 = scmp.eq.s32.totalorder (!%p1796_p6), %s3625_s28, 1 }
 0x15e   : > { %940 = vmatprep.subr.bf16.mxu0 (!%p1796_p6), %v2253_v60  ;;  %v2271_v14 = vld [vmem:[%s3117_s17 + $0x40] sm:$0xff] (!%p1796_p6)   ;;  %v2273_v16 = vld [vmem:[%s3117_s17 + $0x48] sm:$0xff] (!%p1796_p6)   ;;  %v774_v18 = vld [vmem:[#allocation2 + $0x10] sm:$0xff] (!%p1796_p6) }
 0x15f   : > { %v2272_v15 = vld [vmem:[%s3117_s17] sm:$0xff]   ;;  %2001 = vmatprep.subr.bf16.mxu1 %v2271_v14  ;;  %v2274_v19 = vld [vmem:[%s3117_s17 + $0x8] sm:$0xff]   ;;  %v2275_v22 = vld [vmem:[%s3117_s17 + $0x50] sm:$0xff]   ;;  %s1395_s12 = scalar_select %p719_p7, 1, 0 }
 0x160   : > { %2002 = vmatpush3.bf16.msra.mxu1 %v2272_v15  ;;  %v775_v23 = vld [vmem:[#allocation2 + $0x18] sm:$0xff]  ;;  %v807_v24 = vld [vmem:[#allocation3 + $0x10] sm:$0xff]  ;;  %v2279_v32 = vld [vmem:[%s3117_s17 + $0x60] sm:$0xff]  }
 0x161   : > { %941 = vmatpush1.bf16.msra.mxu0 %v2255_v61  ;;  %2003 = vmatprep.subr.bf16.mxu1 %v2273_v16  ;;  %v2276_v25 = vld [vmem:[%s3117_s17 + $0x10] sm:$0xff]   ;;  %v2277_v29 = vld [vmem:[%s3117_s17 + $0x58] sm:$0xff]   ;;  %v776_v33 = vld [vmem:[#allocation2 + $0x20] sm:$0xff] }
 0x162   : > { %942 = vmatprep.subr.bf16.mxu0 %v2256_v62  ;;  %v808_v30 = vld [vmem:[#allocation3 + $0x18] sm:$0xff]  ;;  %v777_v34 = vld [vmem:[#allocation2 + $0x28] sm:$0xff]  ;;  %v2280_v37 = vld [vmem:[%s3117_s17 + $0x20] sm:$0xff]  }
 0x163   : > { %s771_s14 = sadd.f32 1.0, %s720_s6  ;;  %v2278_v31 = vld [vmem:[%s3117_s17 + $0x18] sm:$0xff]   ;;  %v2281_v41 = vld [vmem:[%s3117_s17 + $0x68] sm:$0xff]   ;;  %v809_v42 = vld [vmem:[#allocation3 + $0x20] sm:$0xff] }
 0x164   : > { %2004 = vmatpush3.bf16.msra.mxu1 %v2274_v19  ;;  %v810_v43 = vld [vmem:[#allocation3 + $0x28] sm:$0xff]  ;;  %v778_v46 = vld [vmem:[#allocation2 + $0x30] sm:$0xff]  ;;  %v779_v47 = vld [vmem:[#allocation2 + $0x38] sm:$0xff] }
 0x165   : > { %943 = vmatpush1.bf16.msra.mxu0 %v2258_v63  ;;  %v3219_v6 = vstv %s771_s14  ;;  %2005 = vmatprep.subr.bf16.mxu1 %v2275_v22  ;;  %v811_v51 = vld [vmem:[#allocation3 + $0x30] sm:$0xff]  ;;  %v812_v52 = vld [vmem:[#allocation3 + $0x38] sm:$0xff]  ;;  %v780_v55 = vld [vmem:[#allocation2 + $0x40] sm:$0xff] }
 0x166   : > { %944 = vmatprep.subr.bf16.mxu0 %v2259_v0  ;;  %v789_v12 = vmul.f32 %v3219_v6, %v772_v4  ;;  %v790_v13 = vmul.f32 %v3219_v6, %v773_v5  ;;  %v791_v27 = vmul.f32 %v3219_v6, %v774_v18  ;;  %v792_v28 = vmul.f32 %v3219_v6, %v775_v23  ;;  %v781_v56 = vld [vmem:[#allocation2 + $0x48] sm:$0xff]  ;;  %v813_v61 = vld [vmem:[#allocation3 + $0x40] sm:$0xff] }
 0x167   : > { %v793_v39 = vmul.f32 %v3219_v6, %v776_v33  ;;  %v794_v40 = vmul.f32 %v3219_v6, %v777_v34  ;;  %v795_v49 = vmul.f32 %v3219_v6, %v778_v46  ;;  %v796_v50 = vmul.f32 %v3219_v6, %v779_v47  ;;  %v814_v62 = vld [vmem:[#allocation3 + $0x48] sm:$0xff]  ;;  %v817_v16 = vld [vmem:[#allocation3 + $0x60] sm:$0xff]  ;;  %v2285_v33 = vld [vmem:[%s3117_s17 + $0x78] sm:$0xff]  }
 0x168   : > { %v821_v20 = vadd.f32 %v805_v9, %v789_v12  ;;  %v822_v21 = vadd.f32 %v806_v10, %v790_v13  ;;  %2006 = vmatpush3.bf16.msra.mxu1 %v2276_v25  ;;  %v823_v35 = vadd.f32 %v807_v24, %v791_v27  ;;  %v824_v36 = vadd.f32 %v808_v30, %v792_v28  ;;  %v785_v12 = vld [vmem:[#allocation2 + $0x68] sm:$0xff]  ;;  %v819_v25 = vld [vmem:[#allocation3 + $0x70] sm:$0xff]  ;;  %v2286_v34 = vld [vmem:[%s3117_s17 + $0x38] sm:$0xff]  }
 0x169   : > { %945 = vmatpush1.bf16.msra.mxu0 %v2261_v1  ;;  %2007 = vmatprep.subr.bf16.mxu1 %v2277_v29  ;;  %v825_v44 = vadd.f32 %v809_v42, %v793_v39  ;;  %v826_v45 = vadd.f32 %v810_v43, %v794_v40  ;;  %v827_v53 = vadd.f32 %v811_v51, %v795_v49  ;;  %v782_v1 = vld [vmem:[#allocation2 + $0x50] sm:$0xff]  ;;  %v2282_v30 = vld [vmem:[%s3117_s17 + $0x28] sm:$0xff]  }
 0x16a   : > { %946 = vmatprep.subr.bf16.mxu0 %v2262_v2  ;;  %v837_v26 = vpack.c.bf16 %v822_v21, %v821_v20  ;;  %v838_v38 = vpack.c.bf16 %v824_v36, %v823_v35  ;;  %v828_v54 = vadd.f32 %v812_v52, %v796_v50  ;;  %v797_v59 = vmul.f32 %v3219_v6, %v780_v55  ;;  %v783_v2 = vld [vmem:[#allocation2 + $0x58] sm:$0xff]  ;;  %v786_v20 = vld [vmem:[#allocation2 + $0x70] sm:$0xff] }
 0x16b   : > { %v839_v48 = vpack.c.bf16 %v826_v45, %v825_v44  ;;  %v798_v60 = vmul.f32 %v3219_v6, %v781_v56  ;;  %v799_v4 = vmul.f32 %v3219_v6, %v782_v1  ;;  %v800_v5 = vmul.f32 %v3219_v6, %v783_v2  ;;  %v787_v21 = vld [vmem:[#allocation2 + $0x78] sm:$0xff] }
 0x16c   : > { %2008 = vmatpush3.bf16.msra.mxu1 %v2278_v31  ;;  %v840_v58 = vpack.c.bf16 %v828_v54, %v827_v53  ;;  %v829_v63 = vadd.f32 %v813_v61, %v797_v59  ;;  %v802_v15 = vmul.f32 %v3219_v6, %v785_v12  ;;  %v803_v23 = vmul.f32 %v3219_v6, %v786_v20  ;;  %v2283_v31 = vld [vmem:[%s3117_s17 + $0x70] sm:$0xff]  }
 0x16d   : > { %947 = vmatpush1.bf16.msra.mxu0 %v2264_v3  ;;  %2009 = vmatprep.subr.bf16.mxu1 %v2279_v32  ;;  %v830_v0 = vadd.f32 %v814_v62, %v798_v60  ;;  %v804_v24 = vmul.f32 %v3219_v6, %v787_v21  ;;  %v2284_v32 = vld [vmem:[%s3117_s17 + $0x30] sm:$0xff]  }
 0x16e   : > { %948 = vmatprep.subr.bf16.mxu0 %v2265_v7  ;;  %v815_v7 = vld [vmem:[#allocation3 + $0x50] sm:$0xff]  ;;  %v835_v27 = vadd.f32 %v819_v25, %v803_v23 }
 0x16f   : > { %v841_v3 = vpack.c.bf16 %v830_v0, %v829_v63  ;;  %v831_v9 = vadd.f32 %v815_v7, %v799_v4 }
 0x170   : > { %2010 = vmatpush3.bf16.msra.mxu1 %v2280_v37  ;;  %v737_v37 = vld [vmem:[%s3137_s24] sm:$0x3] }
 0x171   : > { %949 = vmatpush1.bf16.msra.mxu0 %v2267_v8  ;;  %2011 = vmatprep.subr.bf16.mxu1 %v2281_v41  ;;  %v816_v8 = vld [vmem:[#allocation3 + $0x58] sm:$0xff] }
 0x172   : > { %950 = vmatprep.subr.bf16.mxu0 %v2268_v11  ;;  %v832_v10 = vadd.f32 %v816_v8, %v800_v5  ;;  %v784_v11 = vld [vmem:[#allocation2 + $0x60] sm:$0xff] }
 0x173   : > { %v801_v14 = vmul.f32 %v3219_v6, %v784_v11  ;;  %v846_v6 = vlaneseq }
 0x174   : > { %v842_v13 = vpack.c.bf16 %v832_v10, %v831_v9  ;;  %2012 = vmatpush3.bf16.msra.mxu1 %v2282_v30 }
 0x175   : > { %951 = vmatpush1.bf16.msra.mxu0 %v2270_v17  ;;  %v818_v17 = vld [vmem:[#allocation3 + $0x68] sm:$0xff]  ;;  %v833_v18 = vadd.f32 %v817_v16, %v801_v14  ;;  %2013 = vmatprep.subr.bf16.mxu1 %v2283_v31  ;;  %v3264_v35 = vshrl.u32 %v846_v6, 7 }
 0x176   : > { %v834_v19 = vadd.f32 %v818_v17, %v802_v15 }
 0x177   : > { %v848_v36 = vsub.s32 0, %v3264_v35 }
 0x178   : > { %969 = vmatmul.mubr.bf16.vlgmr.msra.gmra.mrb[0].mxu0 %v837_v26  ;;  %v843_v22 = vpack.c.bf16 %v834_v19, %v833_v18  ;;  %v820_v26 = vld [vmem:[#allocation3 + $0x78] sm:$0xff]  ;;  %2014 = vmatpush3.bf16.msra.mxu1 %v2284_v32 }
 0x179   : > { %978 = vmatprep.mubr.bf16.mxu0 %v2660_v57  ;;  %v836_v28 = vadd.f32 %v820_v26, %v804_v24  ;;  %2015 = vmatprep.subr.bf16.mxu1 %v2285_v33 }
 0x17b   : > { %v844_v29 = vpack.c.bf16 %v836_v28, %v835_v27 }
 0x17c   : > { %2016 = vmatpush3.bf16.msra.mxu1 %v2286_v34 }
 0x180   : > { %979 = vmatmul.mubr.bf16.gmra.mrb[4].mxu0 %v838_v38  ;;  %v3269_v38 = vrot.slane %v737_v37, %v848_v36 }
 0x181   : > { %988 = vmatprep.mubr.bf16.mxu0 %v2660_v57 }
 0x188   : > { %989 = vmatmul.mubr.bf16.gmra.mrb[8].mxu0 %v839_v48 }
 0x189   : > { %998 = vmatprep.mubr.bf16.mxu0 %v2660_v57 }
 0x190   : > { %999 = vmatmul.mubr.bf16.gmra.mrb[12].mxu0 %v840_v58 }
 0x191   : > { %1008 = vmatprep.mubr.bf16.mxu0 %v2660_v57 }
 0x198   : > { %1009 = vmatmul.mubr.bf16.gmra.mrb[16].mxu0 %v841_v3 }
 0x199   : > { %1018 = vmatprep.mubr.bf16.mxu0 %v2660_v57 }
 0x1a0   : > { %1019 = vmatmul.mubr.bf16.gmra.mrb[20].mxu0 %v842_v13 }
 0x1a1   : > { %1028 = vmatprep.mubr.bf16.mxu0 %v2660_v57 }
 0x1a8   : > { %1029 = vmatmul.mubr.bf16.gmra.mrb[24].mxu0 %v843_v22 }
 0x1a9   : > { %1038 = vmatprep.mubr.bf16.mxu0 %v2660_v57  ;;  %v852_v57 = vsub.s32 1, %v3264_v35 }
 0x1ab   : > { %v3271_v39 = vrot.slane %v737_v37, %v852_v57 }
 0x1b0   : > { %1039 = vmatmul.mubr.bf16.gmra.mrb[28].mxu0 %v844_v29 }
 0x24b   : > { %v970_v40 = vpop.f32.mrb[0].mxu0 }
 0x24c   : > { %v971_v41 = vadd.f32 %v970_v40, %v3269_v38  ;;  %v972_v42 = vpop.f32.mrb[1].mxu0 }
 0x24d   : > { %v973_v43 = vadd.f32 %v972_v42, %v3271_v39  ;;  %v974_v44 = vpop.f32.mrb[2].mxu0 }
 0x24e   : > { %v975_v45 = vadd.f32 %v974_v44, %v3269_v38  ;;  %v976_v46 = vpop.f32.mrb[3].mxu0  ;;  %v1049_v48 = vmax.f32 %v971_v41, 0.0 }
 0x24f   : > { %v977_v47 = vadd.f32 %v976_v46, %v3271_v39  ;;  %v1050_v50 = vmax.f32 %v973_v43, 0.0 }
 0x250   : > { %v1051_v49 = vmax.f32 %v975_v45, 0.0 }
 0x251   : > { %v1052_v51 = vmax.f32 %v977_v47, 0.0 }
 0x252   : > { %v1081_v52 = vpack.c.bf16 %v1051_v49, %v1049_v48 }
 0x253   : > { %v980_v53 = vpop.f32.mrb[4].mxu0  ;;  %v1082_v54 = vpack.c.bf16 %v1052_v51, %v1050_v50 }
 0x254   : > { %v981_v55 = vadd.f32 %v980_v53, %v3269_v38  ;;  %v982_v56 = vpop.f32.mrb[5].mxu0 }
 0x255   : > { %v983_v58 = vadd.f32 %v982_v56, %v3271_v39  ;;  %v984_v59 = vpop.f32.mrb[6].mxu0  ;;  %1231 = vmatprep.mubr.bf16.mxu1 %v1082_v54 }
 0x256   : > { %v985_v60 = vadd.f32 %v984_v59, %v3269_v38  ;;  %v986_v61 = vpop.f32.mrb[7].mxu0  ;;  %1232 = vmatmul.mubr.bf16.vlgmr.msra.gmra.mrb[0].mxu1 %v1081_v52  ;;  %v1053_v63 = vmax.f32 %v981_v55, 0.0 }
 0x257   : > { %v987_v62 = vadd.f32 %v986_v61, %v3271_v39  ;;  %v1054_v1 = vmax.f32 %v983_v58, 0.0 }
 0x258   : > { %v1055_v0 = vmax.f32 %v985_v60, 0.0 }
 0x259   : > { %v1056_v2 = vmax.f32 %v987_v62, 0.0 }
 0x25a   : > { %v1083_v3 = vpack.c.bf16 %v1055_v0, %v1053_v63 }
 0x25b   : > { %v1084_v4 = vpack.c.bf16 %v1056_v2, %v1054_v1  ;;  %v990_v5 = vpop.f32.mrb[8].mxu0 }
 0x25c   : > { %v991_v7 = vadd.f32 %v990_v5, %v3269_v38  ;;  %v992_v8 = vpop.f32.mrb[9].mxu0 }
 0x25d   : > { %v993_v9 = vadd.f32 %v992_v8, %v3271_v39  ;;  %v994_v10 = vpop.f32.mrb[10].mxu0  ;;  %1239 = vmatprep.mubr.bf16.mxu1 %v1084_v4 }
 0x25e   : > { %v995_v11 = vadd.f32 %v994_v10, %v3269_v38  ;;  %v996_v12 = vpop.f32.mrb[11].mxu0  ;;  %1240 = vmatmul.mubr.bf16.gmra.mrb[4].mxu1 %v1083_v3  ;;  %v1057_v14 = vmax.f32 %v991_v7, 0.0 }
 0x25f   : > { %v997_v13 = vadd.f32 %v996_v12, %v3271_v39  ;;  %v1058_v16 = vmax.f32 %v993_v9, 0.0 }
 0x260   : > { %v1059_v15 = vmax.f32 %v995_v11, 0.0 }
 0x261   : > { %v1060_v17 = vmax.f32 %v997_v13, 0.0 }
 0x262   : > { %v1085_v18 = vpack.c.bf16 %v1059_v15, %v1057_v14 }
 0x263   : > { %v1086_v19 = vpack.c.bf16 %v1060_v17, %v1058_v16  ;;  %v1000_v20 = vpop.f32.mrb[12].mxu0 }
 0x264   : > { %v1001_v21 = vadd.f32 %v1000_v20, %v3269_v38  ;;  %v1002_v22 = vpop.f32.mrb[13].mxu0 }
 0x265   : > { %v1003_v23 = vadd.f32 %v1002_v22, %v3271_v39  ;;  %v1004_v24 = vpop.f32.mrb[14].mxu0  ;;  %1247 = vmatprep.mubr.bf16.mxu1 %v1086_v19 }
 0x266   : > { %v1005_v25 = vadd.f32 %v1004_v24, %v3269_v38  ;;  %v1006_v26 = vpop.f32.mrb[15].mxu0  ;;  %1248 = vmatmul.mubr.bf16.gmra.mrb[8].mxu1 %v1085_v18  ;;  %v1061_v28 = vmax.f32 %v1001_v21, 0.0 }
 0x267   : > { %v1007_v27 = vadd.f32 %v1006_v26, %v3271_v39  ;;  %v1062_v30 = vmax.f32 %v1003_v23, 0.0 }
 0x268   : > { %v1063_v29 = vmax.f32 %v1005_v25, 0.0 }
 0x269   : > { %v1064_v31 = vmax.f32 %v1007_v27, 0.0 }
 0x26a   : > { %v1087_v32 = vpack.c.bf16 %v1063_v29, %v1061_v28 }
 0x26b   : > { %v1088_v33 = vpack.c.bf16 %v1064_v31, %v1062_v30  ;;  %v1010_v34 = vpop.f32.mrb[16].mxu0  ;;  %v3307_v30 = vstv %s3126_s20 }
 0x26c   : > { %v1011_v6 = vadd.f32 %v1010_v34, %v3269_v38  ;;  %v1012_v36 = vpop.f32.mrb[17].mxu0  ;;  %vm1331_vm0 = vcmp.lt.s32.totalorder %v3264_v35, %v3307_v30 }
 0x26d   : > { %v1013_v37 = vadd.f32 %v1012_v36, %v3271_v39  ;;  %v1014_v57 = vpop.f32.mrb[18].mxu0  ;;  %1255 = vmatprep.mubr.bf16.mxu1 %v1088_v33 }
 0x26e   : > { %v1015_v40 = vadd.f32 %v1014_v57, %v3269_v38  ;;  %v1016_v41 = vpop.f32.mrb[19].mxu0  ;;  %1256 = vmatmul.mubr.bf16.gmra.mrb[12].mxu1 %v1087_v32  ;;  %v1065_v43 = vmax.f32 %v1011_v6, 0.0 }
 0x26f   : > { %v1017_v42 = vadd.f32 %v1016_v41, %v3271_v39  ;;  %v1066_v45 = vmax.f32 %v1013_v37, 0.0  ;;  %v1396_v37 = vstv %s1395_s12 }
 0x270   : > { %v1067_v44 = vmax.f32 %v1015_v40, 0.0  ;;  %vm3323_vm2 = vcmp.eq.s32.totalorder %v1396_v37, 1  ;;  %v1306_v37 = vadd.s32 72, %v3264_v35 }
 0x271   : > { %v1068_v46 = vmax.f32 %v1017_v42, 0.0  ;;  %v1299_v42 = vadd.s32 16, %v3264_v35 }
 0x272   : > { %v1089_v47 = vpack.c.bf16 %v1067_v44, %v1065_v43  ;;  %vm1340_vm10 = vcmp.lt.s32.totalorder %v1306_v37, %v3307_v30 }
 0x273   : > { %v1090_v48 = vpack.c.bf16 %v1068_v46, %v1066_v45  ;;  %v1020_v49 = vpop.f32.mrb[20].mxu0  ;;  %vm1333_vm3 = vcmp.lt.s32.totalorder %v1299_v42, %v3307_v30 }
 0x274   : > { %v1021_v50 = vadd.f32 %v1020_v49, %v3269_v38  ;;  %v1022_v51 = vpop.f32.mrb[21].mxu0 }
 0x275   : > { %v1023_v52 = vadd.f32 %v1022_v51, %v3271_v39  ;;  %v1024_v53 = vpop.f32.mrb[22].mxu0  ;;  %1263 = vmatprep.mubr.bf16.mxu1 %v1090_v48  ;;  %v1300_v48 = vadd.s32 24, %v3264_v35 }
 0x276   : > { %v1025_v54 = vadd.f32 %v1024_v53, %v3269_v38  ;;  %v1026_v55 = vpop.f32.mrb[23].mxu0  ;;  %1264 = vmatmul.mubr.bf16.gmra.mrb[16].mxu1 %v1089_v47  ;;  %v1069_v58 = vmax.f32 %v1021_v50, 0.0 }
 0x277   : > { %v1027_v56 = vadd.f32 %v1026_v55, %v3271_v39  ;;  %v1070_v60 = vmax.f32 %v1023_v52, 0.0  ;;  %vm1334_vm4 = vcmp.lt.s32.totalorder %v1300_v48, %v3307_v30 }
 0x278   : > { %v1071_v59 = vmax.f32 %v1025_v54, 0.0 }
 0x279   : > { %v1072_v61 = vmax.f32 %v1027_v56, 0.0 }
 0x27a   : > { %v1091_v62 = vpack.c.bf16 %v1071_v59, %v1069_v58 }
 0x27b   : > { %v1092_v63 = vpack.c.bf16 %v1072_v61, %v1070_v60  ;;  %v1030_v0 = vpop.f32.mrb[24].mxu0  ;;  %v1301_v61 = vadd.s32 32, %v3264_v35 }
 0x27c   : > { %v1031_v1 = vadd.f32 %v1030_v0, %v3269_v38  ;;  %v1032_v2 = vpop.f32.mrb[25].mxu0 }
 0x27d   : > { %v1033_v3 = vadd.f32 %v1032_v2, %v3271_v39  ;;  %v1034_v4 = vpop.f32.mrb[26].mxu0  ;;  %1271 = vmatprep.mubr.bf16.mxu1 %v1092_v63  ;;  %v1302_v2 = vadd.s32 40, %v3264_v35  ;;  %vm1335_vm5 = vcmp.lt.s32.totalorder %v1301_v61, %v3307_v30 }
 0x27e   : > { %v1035_v5 = vadd.f32 %v1034_v4, %v3269_v38  ;;  %v1036_v7 = vpop.f32.mrb[27].mxu0  ;;  %1272 = vmatmul.mubr.bf16.gmra.mrb[20].mxu1 %v1091_v62  ;;  %v1073_v9 = vmax.f32 %v1031_v1, 0.0 }
 0x27f   : > { %v1037_v8 = vadd.f32 %v1036_v7, %v3271_v39  ;;  %v1074_v11 = vmax.f32 %v1033_v3, 0.0  ;;  %vm1336_vm6 = vcmp.lt.s32.totalorder %v1302_v2, %v3307_v30 }
 0x280   : > { %v1075_v10 = vmax.f32 %v1035_v5, 0.0 }
 0x281   : > { %v1076_v12 = vmax.f32 %v1037_v8, 0.0 }
 0x282   : > { %v1093_v13 = vpack.c.bf16 %v1075_v10, %v1073_v9 }
 0x283   : > { %v1094_v14 = vpack.c.bf16 %v1076_v12, %v1074_v11  ;;  %v1040_v15 = vpop.f32.mrb[28].mxu0 }
 0x284   : > { %v1041_v16 = vadd.f32 %v1040_v15, %v3269_v38  ;;  %v1042_v17 = vpop.f32.mrb[29].mxu0  ;;  %v1303_v15 = vadd.s32 48, %v3264_v35 }
 0x285   : > { %v1043_v18 = vadd.f32 %v1042_v17, %v3271_v39  ;;  %v1044_v19 = vpop.f32.mrb[30].mxu0  ;;  %1279 = vmatprep.mubr.bf16.mxu1 %v1094_v14 }
 0x286   : > { %v1045_v20 = vadd.f32 %v1044_v19, %v3269_v38  ;;  %v1046_v21 = vpop.f32.mrb[31].mxu0  ;;  %1280 = vmatmul.mubr.bf16.gmra.mrb[24].mxu1 %v1093_v13  ;;  %v1077_v23 = vmax.f32 %v1041_v16, 0.0  ;;  %v3314_v38 = vld [vmem:[%s551_s4] ss:$0 sm:$0xff]  ;;  %vm1337_vm7 = vcmp.lt.s32.totalorder %v1303_v15, %v3307_v30 }
 0x287   : > { %v1047_v22 = vadd.f32 %v1046_v21, %v3271_v39  ;;  %v1078_v25 = vmax.f32 %v1043_v18, 0.0  ;;  %v1298_v39 = vadd.s32 8, %v3264_v35 }
 0x288   : > { %v1079_v24 = vmax.f32 %v1045_v20, 0.0  ;;  %v1304_v20 = vadd.s32 56, %v3264_v35 }
 0x289   : > { %v1080_v26 = vmax.f32 %v1047_v22, 0.0  ;;  %vm1332_vm1 = vcmp.lt.s32.totalorder %v1298_v39, %v3307_v30 }
 0x28a   : > { %v1095_v27 = vpack.c.bf16 %v1079_v24, %v1077_v23  ;;  %vm1338_vm8 = vcmp.lt.s32.totalorder %v1304_v20, %v3307_v30 }
 0x28b   : > { %v1096_v28 = vpack.c.bf16 %v1080_v26, %v1078_v25 }
 0x28d   : > { %1287 = vmatprep.mubr.bf16.mxu1 %v1096_v28 }
 0x28e   : > { %1288 = vmatmul.mubr.bf16.gmra.mrb[28].mxu1 %v1095_v27 }
 0x329   : > { %v2017_v29 = vpop.f32.mrb[0].mxu1 }
 0x32a   : > { %v2018_v31 = vpop.f32.mrb[1].mxu1 }
 0x32b   : > { %v2019_v32 = vadd.f32 %v2018_v31, %v2017_v29  ;;  %v2020_v33 = vpop.f32.mrb[2].mxu1 }
 0x32c   : > { %v2021_v34 = vpop.f32.mrb[3].mxu1 }
 0x32d   : > { %v1234_v6 = vadd.f32 %v2019_v32, %v3314_v38  ;;  %v2022_v36 = vadd.f32 %v2021_v34, %v2020_v33  ;;  %v1305_v32 = vadd.s32 64, %v3264_v35 }
 0x32f   : > { %v1347_v57 = vsel %vm1331_vm0, %v1234_v6, 0.0  ;;  %v1237_v40 = vadd.f32 %v2022_v36, %v3314_v38  ;;  %vm1339_vm9 = vcmp.lt.s32.totalorder %v1305_v32, %v3307_v30 }
 0x330   : > { %v1363_v41 = vmax.f32 %v1347_v57, 0.0  ;;  %1494 = vst [vmem:[#allocation20] sm:$0xff] %v1347_v57 }
 0x331   : > { %v1348_v44 = vsel %vm1332_vm1, %v1237_v40, 0.0  ;;  %v2023_v45 = vpop.f32.mrb[4].mxu1 }
 0x332   : > { %1379 = vst [vmem:[#allocation2] sm:$0xff] %v1363_v41  ;;  %v1364_v46 = vmax.f32 %v1348_v44, 0.0  ;;  %1495 = vst [vmem:[#allocation20 + $0x8] sm:$0xff] %v1348_v44  ;;  %v2024_v47 = vpop.f32.mrb[5].mxu1  ;;  %v1398_v51 = vsel %vm3323_vm2, %v1347_v57, %v1363_v41 }
 0x333   : > { %v2025_v49 = vadd.f32 %v2024_v47, %v2023_v45  ;;  %v2026_v50 = vpop.f32.mrb[6].mxu1 }
 0x334   : > { %1380 = vst [vmem:[#allocation2 + $0x8] sm:$0xff] %v1364_v46  ;;  %v1399_v52 = vsel %vm3323_vm2, %v1348_v44, %v1364_v46  ;;  %v2027_v53 = vpop.f32.mrb[7].mxu1 }
 0x335   : > { %v1942_v54 = vpack.c.bf16 %v1399_v52, %v1398_v51  ;;  %v1242_v55 = vadd.f32 %v2025_v49, %v3314_v38  ;;  %v2028_v56 = vadd.f32 %v2027_v53, %v2026_v50  ;;  %v1307_v51 = vadd.s32 80, %v3264_v35 }
 0x337   : > { %1943 = vst [vmem:[%s3162_s18] sm:$0xff] %v1942_v54   ;;  %v1349_v58 = vsel %vm1333_vm3, %v1242_v55, 0.0  ;;  %v1245_v59 = vadd.f32 %v2028_v56, %v3314_v38  ;;  %v1308_v56 = vadd.s32 88, %v3264_v35  ;;  %vm1341_vm11 = vcmp.lt.s32.totalorder %v1307_v51, %v3307_v30 }
 0x338   : > { %v1365_v60 = vmax.f32 %v1349_v58, 0.0  ;;  %1496 = vst [vmem:[#allocation20 + $0x10] sm:$0xff] %v1349_v58 }
 0x339   : > { %v1350_v62 = vsel %vm1334_vm4, %v1245_v59, 0.0  ;;  %v2029_v63 = vpop.f32.mrb[8].mxu1  ;;  %vm1342_vm12 = vcmp.lt.s32.totalorder %v1308_v56, %v3307_v30 }
 0x33a   : > { %1381 = vst [vmem:[#allocation2 + $0x10] sm:$0xff] %v1365_v60  ;;  %v1366_v0 = vmax.f32 %v1350_v62, 0.0  ;;  %1497 = vst [vmem:[#allocation20 + $0x18] sm:$0xff] %v1350_v62  ;;  %v2030_v1 = vpop.f32.mrb[9].mxu1  ;;  %v1400_v5 = vsel %vm3323_vm2, %v1349_v58, %v1365_v60 }
 0x33b   : > { %v2031_v3 = vadd.f32 %v2030_v1, %v2029_v63  ;;  %v2032_v4 = vpop.f32.mrb[10].mxu1 }
 0x33c   : > { %1382 = vst [vmem:[#allocation2 + $0x18] sm:$0xff] %v1366_v0  ;;  %v1401_v7 = vsel %vm3323_vm2, %v1350_v62, %v1366_v0  ;;  %v2033_v8 = vpop.f32.mrb[11].mxu1 }
 0x33d   : > { %v1947_v9 = vpack.c.bf16 %v1401_v7, %v1400_v5  ;;  %v1250_v10 = vadd.f32 %v2031_v3, %v3314_v38  ;;  %v2034_v11 = vadd.f32 %v2033_v8, %v2032_v4  ;;  %v1309_v5 = vadd.s32 96, %v3264_v35 }
 0x33f   : > { %1994 = vst [vmem:[%s3162_s18 + $0x8] sm:$0xff] %v1947_v9   ;;  %v1351_v12 = vsel %vm1335_vm5, %v1250_v10, 0.0  ;;  %v1253_v13 = vadd.f32 %v2034_v11, %v3314_v38  ;;  %v1310_v11 = vadd.s32 104, %v3264_v35  ;;  %vm1343_vm13 = vcmp.lt.s32.totalorder %v1309_v5, %v3307_v30 }
 0x340   : > { %v1367_v14 = vmax.f32 %v1351_v12, 0.0  ;;  %1498 = vst [vmem:[#allocation20 + $0x20] sm:$0xff] %v1351_v12 }
 0x341   : > { %v1352_v16 = vsel %vm1336_vm6, %v1253_v13, 0.0  ;;  %v2035_v17 = vpop.f32.mrb[12].mxu1  ;;  %vm1344_vm14 = vcmp.lt.s32.totalorder %v1310_v11, %v3307_v30 }
 0x342   : > { %1383 = vst [vmem:[#allocation2 + $0x20] sm:$0xff] %v1367_v14  ;;  %v1368_v18 = vmax.f32 %v1352_v16, 0.0  ;;  %1499 = vst [vmem:[#allocation20 + $0x28] sm:$0xff] %v1352_v16  ;;  %v2036_v19 = vpop.f32.mrb[13].mxu1  ;;  %v1402_v23 = vsel %vm3323_vm2, %v1351_v12, %v1367_v14 }
 0x343   : > { %v2037_v21 = vadd.f32 %v2036_v19, %v2035_v17  ;;  %v2038_v22 = vpop.f32.mrb[14].mxu1 }
 0x344   : > { %1384 = vst [vmem:[#allocation2 + $0x28] sm:$0xff] %v1368_v18  ;;  %v1403_v24 = vsel %vm3323_vm2, %v1352_v16, %v1368_v18  ;;  %v2039_v25 = vpop.f32.mrb[15].mxu1 }
 0x345   : > { %v1952_v26 = vpack.c.bf16 %v1403_v24, %v1402_v23  ;;  %v1258_v27 = vadd.f32 %v2037_v21, %v3314_v38  ;;  %v2040_v28 = vadd.f32 %v2039_v25, %v2038_v22  ;;  %v1311_v23 = vadd.s32 112, %v3264_v35 }
 0x347   : > { %1995 = vst [vmem:[%s3162_s18 + $0x10] sm:$0xff] %v1952_v26   ;;  %v1353_v29 = vsel %vm1337_vm7, %v1258_v27, 0.0  ;;  %v1261_v31 = vadd.f32 %v2040_v28, %v3314_v38  ;;  %v1312_v28 = vadd.s32 120, %v3264_v35  ;;  %vm1345_vm15 = vcmp.lt.s32.totalorder %v1311_v23, %v3307_v30 }
 0x348   : > { %v1369_v39 = vmax.f32 %v1353_v29, 0.0  ;;  %1500 = vst [vmem:[#allocation20 + $0x30] sm:$0xff] %v1353_v29 }
 0x349   : > { %v1354_v33 = vsel %vm1338_vm8, %v1261_v31, 0.0  ;;  %v2041_v34 = vpop.f32.mrb[16].mxu1  ;;  %vm1346_vm0 = vcmp.lt.s32.totalorder %v1312_v28, %v3307_v30 }
 0x34a   : > { %1385 = vst [vmem:[#allocation2 + $0x30] sm:$0xff] %v1369_v39  ;;  %v1370_v6 = vmax.f32 %v1354_v33, 0.0  ;;  %1501 = vst [vmem:[#allocation20 + $0x38] sm:$0xff] %v1354_v33  ;;  %v2042_v36 = vpop.f32.mrb[17].mxu1  ;;  %v1404_v41 = vsel %vm3323_vm2, %v1353_v29, %v1369_v39 }
 0x34b   : > { %v2043_v57 = vadd.f32 %v2042_v36, %v2041_v34  ;;  %v2044_v40 = vpop.f32.mrb[18].mxu1 }
 0x34c   : > { %1386 = vst [vmem:[#allocation2 + $0x38] sm:$0xff] %v1370_v6  ;;  %v1405_v42 = vsel %vm3323_vm2, %v1354_v33, %v1370_v6  ;;  %v2045_v44 = vpop.f32.mrb[19].mxu1 }
 0x34d   : > { %v1957_v45 = vpack.c.bf16 %v1405_v42, %v1404_v41  ;;  %v1266_v46 = vadd.f32 %v2043_v57, %v3314_v38  ;;  %v2046_v47 = vadd.f32 %v2045_v44, %v2044_v40 }
 0x34f   : > { %1996 = vst [vmem:[%s3162_s18 + $0x18] sm:$0xff] %v1957_v45   ;;  %v1355_v48 = vsel %vm1339_vm9, %v1266_v46, 0.0  ;;  %v1269_v49 = vadd.f32 %v2046_v47, %v3314_v38 }
 0x350   : > { %v1371_v50 = vmax.f32 %v1355_v48, 0.0  ;;  %1502 = vst [vmem:[#allocation20 + $0x40] sm:$0xff] %v1355_v48 }
 0x351   : > { %v1356_v52 = vsel %vm1340_vm10, %v1269_v49, 0.0  ;;  %v2047_v53 = vpop.f32.mrb[20].mxu1 }
 0x352   : > { %1387 = vst [vmem:[#allocation2 + $0x40] sm:$0xff] %v1371_v50  ;;  %v1372_v54 = vmax.f32 %v1356_v52, 0.0  ;;  %1503 = vst [vmem:[#allocation20 + $0x48] sm:$0xff] %v1356_v52  ;;  %v2048_v55 = vpop.f32.mrb[21].mxu1  ;;  %v1406_v60 = vsel %vm3323_vm2, %v1355_v48, %v1371_v50 }
 0x353   : > { %v2049_v58 = vadd.f32 %v2048_v55, %v2047_v53  ;;  %v2050_v59 = vpop.f32.mrb[22].mxu1 }
 0x354   : > { %1388 = vst [vmem:[#allocation2 + $0x48] sm:$0xff] %v1372_v54  ;;  %v1407_v61 = vsel %vm3323_vm2, %v1356_v52, %v1372_v54  ;;  %v2051_v62 = vpop.f32.mrb[23].mxu1 }
 0x355   : > { %v1962_v63 = vpack.c.bf16 %v1407_v61, %v1406_v60  ;;  %v1274_v0 = vadd.f32 %v2049_v58, %v3314_v38  ;;  %v2052_v1 = vadd.f32 %v2051_v62, %v2050_v59 }
 0x357   : > { %1997 = vst [vmem:[%s3162_s18 + $0x20] sm:$0xff] %v1962_v63   ;;  %v1357_v2 = vsel %vm1341_vm11, %v1274_v0, 0.0  ;;  %v1277_v3 = vadd.f32 %v2052_v1, %v3314_v38 }
 0x358   : > { %v1373_v4 = vmax.f32 %v1357_v2, 0.0  ;;  %1504 = vst [vmem:[#allocation20 + $0x50] sm:$0xff] %v1357_v2 }
 0x359   : > { %v1358_v7 = vsel %vm1342_vm12, %v1277_v3, 0.0  ;;  %v2053_v8 = vpop.f32.mrb[24].mxu1 }
 0x35a   : > { %1389 = vst [vmem:[#allocation2 + $0x50] sm:$0xff] %v1373_v4  ;;  %v1374_v9 = vmax.f32 %v1358_v7, 0.0  ;;  %1505 = vst [vmem:[#allocation20 + $0x58] sm:$0xff] %v1358_v7  ;;  %v2054_v10 = vpop.f32.mrb[25].mxu1  ;;  %v1408_v14 = vsel %vm3323_vm2, %v1357_v2, %v1373_v4 }
 0x35b   : > { %v2055_v12 = vadd.f32 %v2054_v10, %v2053_v8  ;;  %v2056_v13 = vpop.f32.mrb[26].mxu1 }
 0x35c   : > { %1390 = vst [vmem:[#allocation2 + $0x58] sm:$0xff] %v1374_v9  ;;  %v1409_v15 = vsel %vm3323_vm2, %v1358_v7, %v1374_v9  ;;  %v2057_v16 = vpop.f32.mrb[27].mxu1 }
 0x35d   : > { %v1967_v17 = vpack.c.bf16 %v1409_v15, %v1408_v14  ;;  %v1282_v18 = vadd.f32 %v2055_v12, %v3314_v38  ;;  %v2058_v19 = vadd.f32 %v2057_v16, %v2056_v13 }
 0x35f   : > { %1998 = vst [vmem:[%s3162_s18 + $0x28] sm:$0xff] %v1967_v17   ;;  %v1359_v20 = vsel %vm1343_vm13, %v1282_v18, 0.0  ;;  %v1285_v21 = vadd.f32 %v2058_v19, %v3314_v38 }
 0x360   : > { %v1375_v22 = vmax.f32 %v1359_v20, 0.0  ;;  %1506 = vst [vmem:[#allocation20 + $0x60] sm:$0xff] %v1359_v20 }
 0x361   : > { %v1360_v24 = vsel %vm1344_vm14, %v1285_v21, 0.0  ;;  %v2059_v25 = vpop.f32.mrb[28].mxu1 }
 0x362   : > { %1391 = vst [vmem:[#allocation2 + $0x60] sm:$0xff] %v1375_v22  ;;  %v1376_v26 = vmax.f32 %v1360_v24, 0.0  ;;  %1507 = vst [vmem:[#allocation20 + $0x68] sm:$0xff] %v1360_v24  ;;  %v2060_v27 = vpop.f32.mrb[29].mxu1  ;;  %v1410_v39 = vsel %vm3323_vm2, %v1359_v20, %v1375_v22 }
 0x363   : > { %v2061_v29 = vadd.f32 %v2060_v27, %v2059_v25  ;;  %v2062_v31 = vpop.f32.mrb[30].mxu1 }
 0x364   : > { %1392 = vst [vmem:[#allocation2 + $0x68] sm:$0xff] %v1376_v26  ;;  %v1411_v32 = vsel %vm3323_vm2, %v1360_v24, %v1376_v26  ;;  %v2063_v33 = vpop.f32.mrb[31].mxu1 }
 0x365   : > { %v1972_v34 = vpack.c.bf16 %v1411_v32, %v1410_v39  ;;  %v1290_v6 = vadd.f32 %v2061_v29, %v3314_v38  ;;  %v2064_v36 = vadd.f32 %v2063_v33, %v2062_v31 }
 0x367   : > { %1999 = vst [vmem:[%s3162_s18 + $0x30] sm:$0xff] %v1972_v34   ;;  %v1361_v35 = vsel %vm1345_vm15, %v1290_v6, 0.0  ;;  %v1293_v37 = vadd.f32 %v2064_v36, %v3314_v38 }
 0x368   : > { %v1377_v57 = vmax.f32 %v1361_v35, 0.0  ;;  %1508 = vst [vmem:[#allocation20 + $0x70] sm:$0xff] %v1361_v35 }
 0x369   : > { %v1362_v40 = vsel %vm1346_vm0, %v1293_v37, 0.0 }
 0x36a   : > { %1393 = vst [vmem:[#allocation2 + $0x70] sm:$0xff] %v1377_v57  ;;  %v1378_v41 = vmax.f32 %v1362_v40, 0.0  ;;  %1509 = vst [vmem:[#allocation20 + $0x78] sm:$0xff] %v1362_v40  ;;  %v1412_v42 = vsel %vm3323_vm2, %v1361_v35, %v1377_v57 }
 0x36c   : > { %1394 = vst [vmem:[#allocation2 + $0x78] sm:$0xff] %v1378_v41  ;;  %v1413_v44 = vsel %vm3323_vm2, %v1362_v40, %v1378_v41 }
 0x36d   : > { %v1977_v45 = vpack.c.bf16 %v1413_v44, %v1412_v42 }
 0x36f   : > { %2000 = vst [vmem:[%s3162_s18 + $0x38] sm:$0xff] %v1977_v45  }
 0x370 PF: > { %s2661_s15 = smov [#allocation20]   ;;  %s3629_s20 = sld [smem:[#allocation42_spill]] }
 0x371   : > { %s1521_s4 = sshll.u32 %s2661_s15, 4  ;;  %s1522_s4 = int_to_ptr.vmem [resolvable:$true] %s1521_s4 }
 0x372   : > { %s2461_s1 = scalar_lea.vmem %s1522_s4, 2048  ;;  %p2468_p11 = scmp.lt.s32.totalorder %s1522_s4, %s1522_s4 }
 0x373   : > { %p2462_p0 = scmp.ne.s32.totalorder %s1522_s4, %s2461_s1  ;;  %p2469_p3 = scmp.lt.s32.totalorder %s2461_s1, %s2461_s1 }
 0x375   : > { %p2470_p9 = por %p2469_p3, %p2468_p11 }
 0x376   : > { %p3630_p2 = scmp.eq.s32.totalorder %s3629_s20, 3 }
 0x378   : > { %p2463_p4 = pnand %p2462_p0, %p3630_p2 }
 0x37a   : > { %p2464_p12 = pneg %p2463_p4 }
 0x37c   : > { %p2471_p1 = pnand %p2470_p9, %p2464_p12 }
 0x37e   : > { %2474 = shalt.err (!%p2471_p1)
}
 0x37f   : > { %s3631_s21 = sld [smem:[#allocation59_spill]]  ;;  %p3633_p10 = pmov %p3630_p2 }
 0x385   : > { %s3632_s16 = smov %s3631_s21  ;;  %s2475_s9 = scalar_lea.hbm %s3631_s21, 2048 }
 0x386   : > { %p2476_p5 = scmp.ne.s32.totalorder %s3632_s16, %s2475_s9  ;;  %p2481_p6 = scmp.lt.u32.totalorder %s2475_s9, %s3632_s16 }
 0x388   : > { %p2477_p8 = pnand %p2476_p5, %p3633_p10 }
 0x38a   : > { %p2478_p13 = pneg %p2477_p8 }
 0x38c   : > { %p2483_p7 = pnand %p2481_p6, %p2478_p13 }
 0x38e   : > { %2486 = shalt.err (!%p2483_p7)
}
 0x38f   : > { %s2662_s5 = smov 128   ;;  %s3634_s28 = sld [smem:[#allocation40_spill]] }
 0x390   : > { %s3635_s6 = sld [smem:[#allocation44_spill]]  ;;  %s2663_s14 = smov 8  }
 0x391   : > { %p3636_p0 = pmov %p3630_p2  ;;  %s3637_s1 = sld [smem:[#allocation60_spill]] }
 0x392   : > { %s1537_s3 = sshll.u32 %s3162_s18, 4  ;;  %s1511_s21 = scalar_lea.sflag [#allocation22], %s3108_s10  ;;  %s3433_s3 = int_to_ptr.vmem [resolvable:$true] %s1537_s3 }
 0x393   : > { %2091 = dma.vmem_to_hbm [thread:$0]  (%p3636_p0), %s1522_s4, 2048, %s3632_s16, [#allocation8], %s2662_s5, %s2662_s5, %s2663_s14  }
 0x394   : > { %s2487_s9 = scalar_lea.vmem %s3433_s3, 1024  ;;  %s2664_s30 = smov [#allocation21]  }
 0x395   : > { %s1874_s24 = sshll.u32 %s3634_s28, 10  ;;  %p2488_p2 = scmp.ne.s32.totalorder %s3433_s3, %s2487_s9 }
 0x396   : > { %p3638_p4 = scmp.ne.s32.totalorder %s3635_s6, 0  ;;  %s2491_s4 = sshll.u32 %s2664_s30, 4  ;;  %s2492_s4 = int_to_ptr.vmem [resolvable:$false] %s2491_s4 }
 0x397   : > { %s3430_s2 = scalar_lea.hbm %s3637_s1, %s1874_s24  ;;  %s2493_s29 = scalar_lea.vmem %s2492_s4, 2048 }
 0x398   : > { %p2489_p12 = pnand %p2488_p2, %p3638_p4  ;;  %p2494_p3 = scmp.lt.s32.totalorder %s3433_s3, %s2492_s4 }
 0x399   : > { %p2495_p9 = scmp.lt.s32.totalorder %s2493_s29, %s2487_s9 }
 0x39a   : > { %p2490_p11 = pneg %p2489_p12 }
 0x39b   : > { %p2496_p1 = por %p2495_p9, %p2494_p3 }
 0x39d   : > { %p2497_p5 = pnand %p2496_p1, %p2490_p11 }
 0x39f   : > { %2500 = shalt.err (!%p2497_p5)
}
 0x3a0   : > { %s2501_s18 = scalar_lea.hbm %s3430_s2, 1024  ;;  %s2505_s5 = scalar_lea.hbm %s3637_s1, 2048 }
 0x3a1   : > { %p2502_p10 = scmp.ne.s32.totalorder %s3430_s2, %s2501_s18  ;;  %p2506_p6 = scmp.lt.u32.totalorder %s3430_s2, %s3637_s1 }
 0x3a2   : > { %p2507_p7 = scmp.lt.u32.totalorder %s2505_s5, %s2501_s18  ;;  %p2509_p2 = scmp.lt.u32.totalorder %s2501_s18, %s3430_s2 }
 0x3a3   : > { %p2503_p8 = pnand %p2502_p10, %p3638_p4 }
 0x3a4   : > { %p2508_p0 = por %p2507_p7, %p2506_p6 }
 0x3a5   : > { %p2504_p13 = pneg %p2503_p8 }
 0x3a6   : > { %p2510_p12 = por %p2509_p2, %p2508_p0 }
 0x3a8   : > { %p2511_p11 = pnand %p2510_p12, %p2504_p13 }
 0x3aa   : > { %2514 = shalt.err (!%p2511_p11)
}
 0x3ab   : > { %s2665_s23 = smov 64   ;;  %s2666_s17 = smov 4  }
 0x3ac   : > { %2092 = dma.vmem_to_hbm [thread:$0]  (%p3638_p4), %s3433_s3, 1024, %s3430_s2, %s1511_s21, %s2665_s23, %s2665_s23, %s2666_s17  }
 0x3ad   : > { %p3639_p3 = scmp.eq.s32.totalorder %s3629_s20, 3 }
 0x3af   : > { %2592 = dma.done.wait (%p3639_p3), [#allocation8], 2048   ;;  %p3640_p9 = pmov %p3639_p3 }
 0x3b1   : > { %2594 = vsyncadd (%p3640_p9), [#allocation8], 4294965248 }
 0x3b2 PF: > { %s3641_s24 = sld [smem:[#allocation36_spill]]  ;;  %s3642_s12 = sld [smem:[#allocation41_spill]] }
 0x3b3   : > { %p2134_p1 = scmp.ge.s32.totalorder %s2641_s27, 2 }
 0x3b8   : > { %s1556_s15 = sand.u32 1, %s3641_s24   ;;  %p3643_p5 = scmp.ne.s32.totalorder %s3642_s12, 0 }
 0x3b9   : > { %s1557_s9 = scalar_lea.sflag [#allocation22], %s1556_s15 }
 0x3ba   : > { %p2120_p10 = pnand %p2134_p1, %p3643_p5 }
 0x3bc   : > { %2596 = dma.done.wait (!%p2120_p10), %s1557_s9, 1024  }
 0x3bd   : > { %2598 = vsyncadd (!%p2120_p10), %s1557_s9, 4294966272  ;;  %s36_s27 = sadd.s32 1, %s2641_s27   ;;  %s3644_s17 = sld [smem:[#allocation37_spill]] }
 0x3be   : > { %p33_p8 = scmp.ge.s32.totalorder %s36_s27, 6   ;;  %s3645_s20 = sld [smem:[#allocation38_spill]] }
 0x3bf   : > { %s3646_s10 = sld [smem:[#allocation46_spill]]  ;;  %s3647_s6 = sld [smem:[#allocation48_spill]] }
 0x3c0   : > { %s3648_s18 = smov %s2609_s19  ;;  %s3649_s19 = smov %s3000_s7 }
 0x3c1   : > { %s3650_s21 = smov %s2621_s22  ;;  %s3651_s22 = smov %s3003_s0 }
 0x3c2   : > { %s3652_s23 = smov %s2633_s25  ;;  %s3653_s24 = smov %s2637_s26 }
 0x3c3   :  { %35 = sbr.rel (!%p33_p8) target bundleno = 29 (0x1d), region = 195 }
 0x3c5   : > { %s3654_s25 = smov %s3646_s10  ;;  %s3655_s26 = smov %s3647_s6 }
 0x3ca   :  { %1562 = vsyncpa [#allocation7], 1 }
 0x3cb   :  { %1564 = vsyncpa [#allocation7 + $0x1], 1 }
 0x3cc   :  { %1565 = vsyncpa [#allocation18], 1 }
 0x3cd   :  { %1567 = vsyncpa [#allocation18 + $0x1], 1 }
 0x3ce   :  { %1568 = vsyncpa [#allocation8], 1 }
 0x3cf   :  { %1570 = vsyncpa [#allocation8 + $0x1], 1 }
 0x3d0   :  { %1571 = vsyncpa [#allocation22], 1 }
 0x3d1   :  { %1573 = vsyncpa [#allocation22 + $0x1], 1 }
 0x3d2   :  { %1574 = vsyncpa [#allocation9], 1 }
 0x3d3   :  { %1576 = vsyncpa [#allocation9 + $0x1], 1 }
 0x3d4   :  { %1577 = vsyncpa [#allocation12], 1 }
 0x3d5   :  { %1578 = vsyncpa [#allocation10], 1 }
 0x3d6   :  { %1580 = vsyncpa [#allocation10 + $0x1], 1 }
 0x3d7   :  { %1581 = vsyncpa [#allocation15], 1 }
 0x3d8   :  { %1582 = vsyncmov [#allocation5] }
 0x3db   :  { %s1583_s0 = vpop.sfrf %1582 }
 0x3dc   :  { %p1853_p4 = scmp.ne.s32.totalorder %s1583_s0, 0 }
 0x3de   :  { %1587 = shalt.err (%p1853_p4)  }

</bundles_post_ra>
